<compile_context>
chip_gen: v6e
topology: v6e:2x2x1
jax: 0.10.0
libtpu: 0.0.40
codegen_flags: <defaults>
</compile_context>

<pallas_src>
import jax
import jax.numpy as jnp
from jax.experimental import pallas as pl
from jax.experimental.pallas import tpu as pltpu

HIDDEN = 512


def _round_up(n, m):
    return ((n + m - 1) // m) * m


def _mlp_kernel(x_ref, w1_ref, w2_ref, b_ref, o_ref):
    # x_ref: (TM, D_in) f32      w1_ref: (D_in, 512) f32
    # w2_ref: (512, 512) bf16    b_ref:  (2, 512) f32 (row 0 = b1, row 1 = b2)
    x = x_ref[...]
    d_in = w1_ref.shape[0]

    # fc1 as d_in unrolled VPU broadcast-FMAs (K is tiny; keep the MXU free for fc2).
    h = b_ref[0:1, :]                                   # (1, 512), broadcasts over rows
    for k in range(d_in):                               # static unroll, d_in = 4
        h = h + x[:, k:k + 1] * w1_ref[k:k + 1, :]      # (TM,1)*(1,512) -> (TM,512)
    h = jnp.maximum(h, 0.0)

    # fc2 on the MXU: bf16 operands, f32 accumulation.
    y = jnp.dot(h.astype(jnp.bfloat16), w2_ref[...],
                preferred_element_type=jnp.float32)
    o_ref[...] = (y + b_ref[1:2, :]).astype(o_ref.dtype)


def cartpole_feature_extractor(x, w1, b1, w2_bf16, b2, *, tm=128):
    """x: (B, D_in) f32. w1: (D_in, 512) f32, b1: (1, 512) f32,
    w2_bf16: (512, 512) bf16, b2: (1, 512) f32. Returns (B, 512) f32."""
    B, d_in = x.shape

    # Tile the batch axis; pad B up to a multiple of the tile (sublane-aligned).
    tm = min(tm, _round_up(B, 8))
    b_pad = _round_up(B, tm)
    if b_pad != B:
        x = jnp.pad(x, ((0, b_pad - B), (0, 0)))

    biases = jnp.concatenate([b1, b2], axis=0)          # (2, 512) f32

    out = pl.pallas_call(
        _mlp_kernel,
        out_shape=jax.ShapeDtypeStruct((b_pad, HIDDEN), jnp.float32),
        grid=(b_pad // tm,),
        in_specs=[
            # x: batch-tiled block per grid step.
            pl.BlockSpec((tm, d_in), lambda i: (i, 0)),
            # Weights / biases: constant index_map -> fetched once, VMEM-resident.
            pl.BlockSpec((d_in, HIDDEN), lambda i: (0, 0)),
            pl.BlockSpec((HIDDEN, HIDDEN), lambda i: (0, 0)),
            pl.BlockSpec((2, HIDDEN), lambda i: (0, 0)),
        ],
        out_specs=pl.BlockSpec((tm, HIDDEN), lambda i: (i, 0)),
        compiler_params=pltpu.CompilerParams(
            dimension_semantics=("parallel",),          # lets v7x use both TCs
        ),
    )(x, w1, w2_bf16, biases)

    return out[:B] if b_pad != B else out


def init_params(key, input_shape):
    """Deterministic init mirroring nn.Linear's U(-1/sqrt(fan_in), 1/sqrt(fan_in))."""
    k1, k2, k3, k4 = jax.random.split(key, 4)
    bound1 = 1.0 / jnp.sqrt(jnp.float32(input_shape))
    bound2 = 1.0 / jnp.sqrt(jnp.float32(HIDDEN))
    # Stored as (in, out) == transpose of PyTorch's (out, in) weight layout.
    w1 = jax.random.uniform(k1, (input_shape, HIDDEN), jnp.float32, -bound1, bound1)
    b1 = jax.random.uniform(k2, (1, HIDDEN), jnp.float32, -bound1, bound1)
    w2 = jax.random.uniform(k3, (HIDDEN, HIDDEN), jnp.float32, -bound2, bound2)
    b2 = jax.random.uniform(k4, (1, HIDDEN), jnp.float32, -bound2, bound2)
    # fc2 weight stored in bf16 (f32 accumulation happens on the MXU).
    return w1, b1, w2.astype(jnp.bfloat16), b2


def reference(x, w1, b1, w2_bf16, b2):
    """Pure-JAX reference with the same bf16 treatment of the fc2 operands."""
    h = jnp.maximum(x @ w1 + b1, 0.0)
    y = jnp.dot(h.astype(jnp.bfloat16).astype(jnp.float32),
                w2_bf16.astype(jnp.float32)) + b2
    return y


if __name__ == "__main__":
    key = jax.random.PRNGKey(0)
    k_x, k_p = jax.random.split(key)

    batch = 256          # e.g. many env steps / actors stacked into one call
    input_shape = 4      # CartPole observation dim

    x = jax.random.normal(k_x, (batch, input_shape), jnp.float32)
    w1, b1, w2_bf16, b2 = init_params(k_p, input_shape)

    out = cartpole_feature_extractor(x, w1, b1, w2_bf16, b2, tm=128)
    out = jax.block_until_ready(out)

    ref = reference(x, w1, b1, w2_bf16, b2)
    assert out.shape == (batch, HIDDEN)
    assert jnp.allclose(out, ref, atol=1e-2, rtol=1e-2), "mismatch vs JAX reference"

    # Also exercise a small / non-tile-multiple batch (online-RL style).
    x_small = x[:9]
    out_small = jax.block_until_ready(
        cartpole_feature_extractor(x_small, w1, b1, w2_bf16, b2, tm=128))
    assert out_small.shape == (9, HIDDEN)
    assert jnp.allclose(out_small, ref[:9], atol=1e-2, rtol=1e-2), "small-batch mismatch"

    print("KERNEL_OK")
</pallas_src>

<mosaic_0001>
module attributes {stable_mosaic.version = 11 : i64} {
  func.func @_mlp_kernel(%arg0: i32, %arg1: memref<128x4xf32, #tpu.memory_space<vmem>>, %arg2: memref<4x512xf32, #tpu.memory_space<vmem>>, %arg3: memref<512x512xbf16, #tpu.memory_space<vmem>>, %arg4: memref<2x512xf32, #tpu.memory_space<vmem>>, %arg5: memref<128x512xf32, #tpu.memory_space<vmem>>) attributes {dimension_semantics = [#tpu.dimension_semantics<parallel>], iteration_bounds = array<i64: 2>, scalar_prefetch = 0 : i64, scratch_operands = 0 : i64, tpu.core_type = #tpu.core_type<tc>, window_params = [{transform_indices = @transform_0, window_bounds = array<i64: 128, 4>}, {pipeline_mode = #tpu.pipeline_mode<synchronous>, transform_indices = @transform_1, window_bounds = array<i64: 4, 512>}, {pipeline_mode = #tpu.pipeline_mode<synchronous>, transform_indices = @transform_2, window_bounds = array<i64: 512, 512>}, {pipeline_mode = #tpu.pipeline_mode<synchronous>, transform_indices = @transform_3, window_bounds = array<i64: 2, 512>}, {transform_indices = @transform_4, window_bounds = array<i64: 128, 512>}]} {
    %c0 = arith.constant 0 : index
    %c0_0 = arith.constant 0 : index
    %0 = vector.load %arg1[%c0, %c0_0] : memref<128x4xf32, #tpu.memory_space<vmem>>, vector<128x4xf32>
    %c0_1 = arith.constant 0 : index
    %c0_2 = arith.constant 0 : index
    %1 = vector.load %arg4[%c0_1, %c0_2] : memref<2x512xf32, #tpu.memory_space<vmem>>, vector<1x512xf32>
    %2 = vector.extract_strided_slice %0 {offsets = [0, 0], sizes = [128, 1], strides = [1, 1]} : vector<128x4xf32> to vector<128x1xf32>
    %c0_3 = arith.constant 0 : index
    %c0_4 = arith.constant 0 : index
    %3 = vector.load %arg2[%c0_3, %c0_4] : memref<4x512xf32, #tpu.memory_space<vmem>>, vector<1x512xf32>
    %4 = vector.broadcast %2 : vector<128x1xf32> to vector<128x512xf32>
    %5 = vector.broadcast %3 : vector<1x512xf32> to vector<128x512xf32>
    %6 = arith.mulf %4, %5 : vector<128x512xf32>
    %7 = vector.broadcast %1 : vector<1x512xf32> to vector<128x512xf32>
    %8 = arith.addf %7, %6 : vector<128x512xf32>
    %9 = vector.extract_strided_slice %0 {offsets = [0, 1], sizes = [128, 1], strides = [1, 1]} : vector<128x4xf32> to vector<128x1xf32>
    %c1 = arith.constant 1 : index
    %c0_5 = arith.constant 0 : index
    %10 = vector.load %arg2[%c1, %c0_5] : memref<4x512xf32, #tpu.memory_space<vmem>>, vector<1x512xf32>
    %11 = vector.broadcast %9 : vector<128x1xf32> to vector<128x512xf32>
    %12 = vector.broadcast %10 : vector<1x512xf32> to vector<128x512xf32>
    %13 = arith.mulf %11, %12 : vector<128x512xf32>
    %14 = arith.addf %8, %13 : vector<128x512xf32>
    %15 = vector.extract_strided_slice %0 {offsets = [0, 2], sizes = [128, 1], strides = [1, 1]} : vector<128x4xf32> to vector<128x1xf32>
    %c2 = arith.constant 2 : index
    %c0_6 = arith.constant 0 : index
    %16 = vector.load %arg2[%c2, %c0_6] : memref<4x512xf32, #tpu.memory_space<vmem>>, vector<1x512xf32>
    %17 = vector.broadcast %15 : vector<128x1xf32> to vector<128x512xf32>
    %18 = vector.broadcast %16 : vector<1x512xf32> to vector<128x512xf32>
    %19 = arith.mulf %17, %18 : vector<128x512xf32>
    %20 = arith.addf %14, %19 : vector<128x512xf32>
    %21 = vector.extract_strided_slice %0 {offsets = [0, 3], sizes = [128, 1], strides = [1, 1]} : vector<128x4xf32> to vector<128x1xf32>
    %c3 = arith.constant 3 : index
    %c0_7 = arith.constant 0 : index
    %22 = vector.load %arg2[%c3, %c0_7] : memref<4x512xf32, #tpu.memory_space<vmem>>, vector<1x512xf32>
    %23 = vector.broadcast %21 : vector<128x1xf32> to vector<128x512xf32>
    %24 = vector.broadcast %22 : vector<1x512xf32> to vector<128x512xf32>
    %25 = arith.mulf %23, %24 : vector<128x512xf32>
    %26 = arith.addf %20, %25 : vector<128x512xf32>
    %cst = arith.constant 0.000000e+00 : f32
    %27 = vector.broadcast %cst : f32 to vector<128x512xf32>
    %28 = arith.maximumf %26, %27 : vector<128x512xf32>
    %29 = arith.truncf %28 : vector<128x512xf32> to vector<128x512xbf16>
    %c0_8 = arith.constant 0 : index
    %c0_9 = arith.constant 0 : index
    %30 = vector.load %arg3[%c0_8, %c0_9] : memref<512x512xbf16, #tpu.memory_space<vmem>>, vector<512x512xbf16>
    %cst_10 = arith.constant dense<0.000000e+00> : vector<128x512xf32>
    %31 = tpu.matmul %29, %30, %cst_10 {dimension_numbers = #tpu.dot_dimension_numbers<[1], [0], [0], [1], [0, 0, 1, 1], [], []>} : vector<128x512xbf16>, vector<512x512xbf16>, vector<128x512xf32> -> vector<128x512xf32>
    %c1_11 = arith.constant 1 : index
    %c0_12 = arith.constant 0 : index
    %32 = vector.load %arg4[%c1_11, %c0_12] : memref<2x512xf32, #tpu.memory_space<vmem>>, vector<1x512xf32>
    %33 = vector.broadcast %32 : vector<1x512xf32> to vector<128x512xf32>
    %34 = arith.addf %31, %33 : vector<128x512xf32>
    %c0_13 = arith.constant 0 : index
    %c0_14 = arith.constant 0 : index
    %35 = vector.load %arg5[%c0_13, %c0_14] : memref<128x512xf32, #tpu.memory_space<vmem>>, vector<128x512xf32>
    tpu.vector_store %arg5[%c0_13, %c0_14], %34 {strides = array<i32>} : memref<128x512xf32, #tpu.memory_space<vmem>>, vector<128x512xf32>,
    return
  }
  func.func @transform_0(%arg0: i32) -> (i32, i32) {
    %c0_i32 = arith.constant 0 : i32
    %c0_i32_0 = arith.constant 0 : i32
    return %arg0, %c0_i32 : i32, i32
  }
  func.func @transform_1(%arg0: i32) -> (i32, i32) {
    %c0_i32 = arith.constant 0 : i32
    %c0_i32_0 = arith.constant 0 : i32
    %c0_i32_1 = arith.constant 0 : i32
    return %c0_i32, %c0_i32_0 : i32, i32
  }
  func.func @transform_2(%arg0: i32) -> (i32, i32) {
    %c0_i32 = arith.constant 0 : i32
    %c0_i32_0 = arith.constant 0 : i32
    %c0_i32_1 = arith.constant 0 : i32
    return %c0_i32, %c0_i32_0 : i32, i32
  }
  func.func @transform_3(%arg0: i32) -> (i32, i32) {
    %c0_i32 = arith.constant 0 : i32
    %c0_i32_0 = arith.constant 0 : i32
    %c0_i32_1 = arith.constant 0 : i32
    return %c0_i32, %c0_i32_0 : i32, i32
  }
  func.func @transform_4(%arg0: i32) -> (i32, i32) {
    %c0_i32 = arith.constant 0 : i32
    %c0_i32_0 = arith.constant 0 : i32
    return %arg0, %c0_i32 : i32, i32
  }
}

</mosaic_0001>

<bundles_post_ra>
// kernel: tpu_custom_call.1
= control target key start
LH: loop header
LB: loop body
LE: loop exit
PB: predicated region body
PF: predicated region fallthrough
CT: control target
= control target key end

     0   :  { %9 = vsyncpa [#allocation3], 0  ;;  %s4386_s0 = inlined_call_operand.vmem [shape: f32[256,4], index: 0, kind: input, shape index: {}]   ;;  %s4387_s1 = inlined_call_operand.vmem [shape: f32[4,512], index: 1, kind: input, shape index: {}]   ;;  %s4388_s2 = inlined_call_operand.hbm [shape: bf16[512,512], index: 2, kind: input, shape index: {}]   ;;  %s4389_s3 = inlined_call_operand.vmem [shape: f32[2,512], index: 3, kind: input, shape index: {}]   ;;  %s4390_s4 = inlined_call_operand.hbm [shape: f32[256,512], index: 4, kind: output, shape index: {}]  }
   0x1   :  { %10 = vsyncpa [#allocation4], 0 }
   0x2   :  { %12 = vsyncpa [#allocation4 + $0x1], 0  ;;  %s3185_s15 = smov 0   ;;  %s3187_s16 = smov 0  }
   0x3   :  { %s3189_s17 = smov 0   ;;  %s3191_s18 = smov 0  }
   0x4 LB: > { %s3206_s19 = sadd.s32 4294967295, %s3148_s18   ;;  %s2619_s20 = sadd.s32 4294967294, %s3148_s18   ;;  %s3148_s18 = sphi %s3191_s18, %s4578_s18   ;;  %s3144_s17 = sphi %s3189_s17, %s4577_s17   ;;  %s3140_s16 = sphi %s3187_s16, %s4576_s16   ;;  %s3136_s15 = sphi %s3185_s15, %s4575_s15  }
   0x5   : > { %s3210_s21 = sadd.s32 1, %s3148_s18   ;;  %s114_s22 = sadd.s32 1, %s3144_s17 }
   0x6   : > { %s111_s23 = ssub.s32 %s3148_s18, %s3210_s21  ;;  %p124_p0 = scmp.ne.s32.totalorder %s3144_s17, %s3140_s16 }
   0x7   : > { %p112_p1 = scmp.eq.s32.totalorder %s111_s23, 0  ;;  %p125_p2 = scmp.eq.s32.totalorder %s3206_s19, 1 }
   0x8   : > { %p130_p3 = scmp.ne.s32.totalorder %s3140_s16, %s3136_s15  ;;  %p131_p4 = scmp.eq.s32.totalorder %s2619_s20, 1 }
   0x9   : > { %s3221_s24 = scalar_select %p112_p1, %s3144_s17, %s114_s22  }
   0xa   : > { %p3223_p5 = por %p125_p2, %p124_p0  ;;  %p3227_p6 = por %p131_p4, %p130_p3 }
   0xb   : > { %p2620_p7 = scmp.ge.s32.totalorder %s3148_s18, 1  ;;  %p138_p8 = scmp.lt.s32.totalorder %s3148_s18, 3 }
   0xc   : > { %s4439_s26 = scalar_select %p3227_p6, 1, 0 }
   0xd   : > { %p2782_p9 = scmp.eq.s32.totalorder %s3206_s19, 0  ;;  %p3234_p10 = pnand %p2620_p7, %p138_p8 }
   0xe   : > { %s3150_s28 = smov [#allocation2]  }
   0xf   : > { %s153_s29 = sshll.u32 %s3150_s28, 4  ;;  %p2774_p11 = pneg %p3234_p10  ;;  %s154_s29 = int_to_ptr.vmem [resolvable:$true] %s153_s29 }
  0x10   : > { %s3069_s30 = scalar_lea.vmem %s154_s29, 16384  ;;  %p3077_p3 = scmp.lt.s32.totalorder %s154_s29, %s154_s29 }
  0x11   : > { %p2775_p12 = pnand %p2782_p9, %p2774_p11  ;;  %p3070_p0 = scmp.ne.s32.totalorder %s154_s29, %s3069_s30 }
  0x12   : > { %p3078_p4 = scmp.lt.s32.totalorder %s3069_s30, %s3069_s30 }
  0x13   : > { %p3060_p13 = pneg %p2775_p12 }
  0x14   : > { %p3079_p6 = por %p3078_p4, %p3077_p3 }
  0x15   : > { %p3072_p1 = pnand %p3070_p0, %p3060_p13 }
  0x17   : > { %p3073_p2 = pneg %p3072_p1 }
  0x19   : > { %p3080_p7 = pnand %p3079_p6, %p3073_p2 }
  0x1b   : > { %3083 = shalt.err (!%p3080_p7)
}
  0x1c   : > { %s3151_s5 = smov 256   ;;  %s3152_s6 = smov 16  }
  0x1d   : > { %2777 = dma.hbm_to_vmem [thread:$0]  (!%p2775_p12), %s4388_s2, 16384, %s154_s29, [#allocation3], %s3151_s5, %s3151_s5, %s3152_s6  }
  0x1e   : > { %181 = sbr.rel (%p3234_p10) target bundleno = 652 (0x28c), region = 36 }
  0x23   : > { %3127 = dma.done.wait (%p2782_p9), [#allocation3], 16384  }
  0x24   : > { %3129 = vsyncadd (%p2782_p9), [#allocation3], 4294950912  ;;  %s2626_s9 = sshll.u32 %s3206_s19, 4  ;;  %v4394_v0 = vmov 2   ;;  %v4396_v1 = vmov 1   ;;  %v4392_v11 = vmov 3  }
  0x25   : > { %2827 = vset.pattern.permute.xlu0 %v4394_v0  ;;  %2826 = vset.pattern.permute.xlu1 %v4396_v1  ;;  %p208_p6 = scmp.lt.s32.totalorder %s2626_s9, 31  ;;  %v2866_v5 = vld [vmem:[#allocation2 + $0xe4] ss:$16 sps:$4 sm:$0xff]   ;;  %v2870_v7 = vld [vmem:[#allocation2 + $0xe0] ss:$16 sps:$4 sm:$0xff]   ;;  %v4391_v25 = vmov 0  }
  0x26   : > { %v2868_v6 = vld [vmem:[#allocation2 + $0x2e4] ss:$16 sps:$4 sm:$0xff]   ;;  %v2871_v8 = vld [vmem:[#allocation2 + $0x2e0] ss:$16 sps:$4 sm:$0xff]   ;;  %2014 = vmatprep.subr.bf16.mxu0 %v2866_v5  ;;  %s2767_s12 = sshll.u32 %s3206_s19, 13  ;;  %s3157_s27 = smov [#allocation5]  }
  0x27   : > { %s4580_s9 = smov (!%p208_p6, %s2626_s9), 31  ;;  %v2872_v9 = vld [vmem:[#allocation2 + $0xc4] ss:$16 sps:$4 sm:$0xff]   ;;  %2127 = vmatprep.subr.bf16.mxu1 %v2868_v6  ;;  %2015 = vmatpush1.bf16.msra.mxu0 %v2870_v7  ;;  %v2876_v12 = vld [vmem:[#allocation2 + $0xc0] ss:$16 sps:$4 sm:$0xff]   ;;  %s4338_s22 = scalar_lea.hbm %s4390_s4, %s2767_s12 }
  0x28   : > { %s2627_s10 = sshll.u32 %s4580_s9, 3  ;;  %v2874_v10 = vld [vmem:[#allocation2 + $0x2c4] ss:$16 sps:$4 sm:$0xff]   ;;  %v2877_v14 = vld [vmem:[#allocation2 + $0x2c0] ss:$16 sps:$4 sm:$0xff]   ;;  %2128 = vmatpush1.bf16.msra.mxu1 %v2871_v8  ;;  %2016 = vmatprep.subr.bf16.mxu0 %v2872_v9  ;;  %s204_s9 = sand.u32 1, %s3140_s16  }
  0x29   : > { %s3257_s13 = scalar_lea.vmem %s4386_s0, %s2627_s10  ;;  %v2878_v15 = vld [vmem:[#allocation2 + $0xa4] ss:$16 sps:$4 sm:$0xff]   ;;  %2129 = vmatprep.subr.bf16.mxu1 %v2874_v10  ;;  %v2882_v17 = vld [vmem:[#allocation2 + $0xa0] ss:$16 sps:$4 sm:$0xff]   ;;  %s2625_s10 = sshll.u32 %s204_s9, 9 }
  0x2a   : > { %v3260_v2 = vld [vmem:[%s3257_s13] sm:$0xff]  ;;  %v3265_v3 = vld [vmem:[%s3257_s13 + $0x18] sm:$0xff]  ;;  %v3268_v4 = vld [vmem:[%s3257_s13 + $0x8] sm:$0xff]  ;;  %s4195_s11 = scalar_lea.vmem [#allocation5], %s2625_s10  ;;  %s4346_s19 = scalar_lea.sflag [#allocation4], %s204_s9 }
  0x2b   : > { %700 = vperm.xlu0 %2827, %v3260_v2   ;;  %485 = vperm.xlu1 %2826, %v3260_v2   ;;  %v3277_v13 = vld [vmem:[%s3257_s13 + $0x20] sm:$0xff]  ;;  %v3283_v19 = vld [vmem:[%s3257_s13 + $0x38] sm:$0xff]  ;;  %v3286_v21 = vld [vmem:[%s3257_s13 + $0x10] sm:$0xff]  ;;  %s3088_s28 = sshll.u32 %s3157_s27, 4  ;;  %s3089_s28 = int_to_ptr.vmem [resolvable:$false] %s3088_s28 }
  0x2c   : > { %2017 = vmatpush1.bf16.msra.mxu0 %v2876_v12  ;;  %v2880_v16 = vld [vmem:[#allocation2 + $0x2a4] ss:$16 sps:$4 sm:$0xff]   ;;  %2130 = vmatpush1.bf16.msra.mxu1 %v2877_v14  ;;  %v2883_v20 = vld [vmem:[#allocation2 + $0x2a0] ss:$16 sps:$4 sm:$0xff]   ;;  %v3295_v31 = vld [vmem:[%s3257_s13 + $0x28] sm:$0xff]  ;;  %s3090_s29 = scalar_lea.vmem %s3089_s28, 16384 }
  0x2d   : > { %2018 = vmatprep.subr.bf16.mxu0 %v2878_v15  ;;  %v2884_v18 = vld [vmem:[#allocation2 + $0x84] ss:$16 sps:$4 sm:$0xff]   ;;  %2131 = vmatprep.subr.bf16.mxu1 %v2880_v16  ;;  %v2888_v23 = vld [vmem:[#allocation2 + $0x80] ss:$16 sps:$4 sm:$0xff]   ;;  %v3304_v39 = vld [vmem:[%s3257_s13 + $0x58] sm:$0xff] }
  0x2e   : > { %v2886_v22 = vld [vmem:[#allocation2 + $0x284] ss:$16 sps:$4 sm:$0xff]   ;;  %v2889_v26 = vld [vmem:[#allocation2 + $0x280] ss:$16 sps:$4 sm:$0xff]  }
  0x2f   : > { %712 = vperm.xlu0 %2827, %v3265_v3   ;;  %489 = vperm.xlu1 %2826, %v3268_v4   ;;  %v2890_v24 = vld [vmem:[#allocation2 + $0x64] ss:$16 sps:$4 sm:$0xff]   ;;  %v2894_v28 = vld [vmem:[#allocation2 + $0x60] ss:$16 sps:$4 sm:$0xff]  }
  0x30   : > { %2019 = vmatpush1.bf16.msra.mxu0 %v2882_v17  ;;  %2132 = vmatpush1.bf16.msra.mxu1 %v2883_v20  ;;  %v2892_v27 = vld [vmem:[#allocation2 + $0x264] ss:$16 sps:$4 sm:$0xff]   ;;  %v2895_v30 = vld [vmem:[#allocation2 + $0x260] ss:$16 sps:$4 sm:$0xff]  }
  0x31   : > { %2020 = vmatprep.subr.bf16.mxu0 %v2884_v18  ;;  %2133 = vmatprep.subr.bf16.mxu1 %v2886_v22  ;;  %v2896_v29 = vld [vmem:[#allocation2 + $0x44] ss:$16 sps:$4 sm:$0xff]   ;;  %v2900_v33 = vld [vmem:[#allocation2 + $0x40] ss:$16 sps:$4 sm:$0xff]   ;;  %v223_v18 = vld [vmem:[%s3257_s13 + $0x48] sm:$0xff] }
  0x32   : > { %v2898_v32 = vld [vmem:[#allocation2 + $0x244] ss:$16 sps:$4 sm:$0xff]   ;;  %v2901_v36 = vld [vmem:[#allocation2 + $0x240] ss:$16 sps:$4 sm:$0xff]  }
  0x33   : > { %2833 = vset.pattern.permute.xlu0 %v4392_v11  ;;  %2828 = vset.pattern.permute.xlu1 %v4394_v0  ;;  %v2902_v34 = vld [vmem:[#allocation2 + $0x24] ss:$16 sps:$4 sm:$0xff]   ;;  %v2906_v38 = vld [vmem:[#allocation2 + $0x20] ss:$16 sps:$4 sm:$0xff]  }
  0x34   : > { %919 = vperm.xlu0 %2833, %v3268_v4   ;;  %704 = vperm.xlu1 %2828, %v3268_v4   ;;  %v3299_v35 = vld [vmem:[%s3257_s13 + $0x40] sm:$0xff]  ;;  %v3320_v60 = vld [vmem:[%s3257_s13 + $0x50] sm:$0xff] }
  0x35   : > { %2021 = vmatpush1.bf16.msra.mxu0 %v2888_v23  ;;  %2134 = vmatpush1.bf16.msra.mxu1 %v2889_v26  ;;  %v2904_v37 = vld [vmem:[#allocation2 + $0x224] ss:$16 sps:$4 sm:$0xff]   ;;  %v2907_v41 = vld [vmem:[#allocation2 + $0x220] ss:$16 sps:$4 sm:$0xff]   ;;  %v3357_v23 = vld [vmem:[%s3257_s13 + $0x78] sm:$0xff]  ;;  %v313_v26 = vlaneseq }
  0x36   : > { %2022 = vmatprep.subr.bf16.mxu0 %v2890_v24  ;;  %2135 = vmatprep.subr.bf16.mxu1 %v2892_v27  ;;  %v2908_v40 = vld [vmem:[#allocation2 + $0x4] ss:$16 sps:$4 sm:$0xff]   ;;  %v2912_v43 = vld [vmem:[#allocation2] ss:$16 sps:$4 sm:$0xff]   ;;  %4441 = vst [vmem:[#allocation8_spill] sm:$0xff] %v3357_v23 }
  0x37   : > { %v2910_v42 = vld [vmem:[#allocation2 + $0x204] ss:$16 sps:$4 sm:$0xff]   ;;  %v2913_v45 = vld [vmem:[#allocation2 + $0x200] ss:$16 sps:$4 sm:$0xff]  }
  0x38   : > { %931 = vperm.xlu0 %2833, %v3277_v13   ;;  %2829 = vset.pattern.permute.xlu1 %v4392_v11  ;;  %v2914_v44 = vld [vmem:[#allocation2 + $0x1e4] ss:$16 sps:$4 sm:$0xff]   ;;  %v2918_v47 = vld [vmem:[#allocation2 + $0x1e0] ss:$16 sps:$4 sm:$0xff]  }
  0x39   : > { %915 = vperm.xlu1 %2829, %v3260_v2   ;;  %2023 = vmatpush1.bf16.msra.mxu0 %v2894_v28  ;;  %v2916_v46 = vld [vmem:[#allocation2 + $0x3e4] ss:$16 sps:$4 sm:$0xff]   ;;  %v2919_v49 = vld [vmem:[#allocation2 + $0x3e0] ss:$16 sps:$4 sm:$0xff]  }
  0x3a   : > { %2024 = vmatprep.subr.bf16.mxu0 %v2896_v29  ;;  %2136 = vmatpush1.bf16.msra.mxu1 %v2895_v30  ;;  %v2920_v48 = vld [vmem:[#allocation2 + $0x1c4] ss:$16 sps:$4 sm:$0xff]   ;;  %v2924_v51 = vld [vmem:[#allocation2 + $0x1c0] ss:$16 sps:$4 sm:$0xff]   ;;  %v314_v29 = vshrl.u32 %v313_v26, 7 }
  0x3b   : > { %2137 = vmatprep.subr.bf16.mxu1 %v2898_v32  ;;  %v2922_v50 = vld [vmem:[#allocation2 + $0x3c4] ss:$16 sps:$4 sm:$0xff]   ;;  %v2925_v53 = vld [vmem:[#allocation2 + $0x3c0] ss:$16 sps:$4 sm:$0xff]  }
  0x3c   : > { %943 = vperm.xlu0 %2833, %v3283_v19   ;;  %v2926_v52 = vld [vmem:[#allocation2 + $0x1a4] ss:$16 sps:$4 sm:$0xff]   ;;  %v2930_v54 = vld [vmem:[#allocation2 + $0x1a0] ss:$16 sps:$4 sm:$0xff]   ;;  %v3381_v32 = vsub.s32 0, %v314_v29 }
  0x3d   : > { %2830 = vset.pattern.permute.xlu1 %v4391_v25  ;;  %2025 = vmatpush1.bf16.msra.mxu0 %v2900_v33  ;;  %v2928_v55 = vld [vmem:[#allocation2 + $0x3a4] ss:$16 sps:$4 sm:$0xff]   ;;  %v2931_v57 = vld [vmem:[#allocation2 + $0x3a0] ss:$16 sps:$4 sm:$0xff]   ;;  %v3383_v33 = vsub.s32 1, %v314_v29 }
  0x3e   : > { %244 = vperm.xlu1 %2830, %v3286_v21   ;;  %2026 = vmatprep.subr.bf16.mxu0 %v2902_v34  ;;  %v2932_v56 = vld [vmem:[#allocation2 + $0x184] ss:$16 sps:$4 sm:$0xff]   ;;  %v2936_v59 = vld [vmem:[#allocation2 + $0x180] ss:$16 sps:$4 sm:$0xff]   ;;  %4442 = vst [vmem:[#allocation9_spill] sm:$0xff] %v3381_v32  ;;  %v3385_v34 = vsub.s32 2, %v314_v29 }
  0x3f   : > { %2138 = vmatpush1.bf16.msra.mxu1 %v2901_v36  ;;  %v2934_v58 = vld [vmem:[#allocation2 + $0x384] ss:$16 sps:$4 sm:$0xff]   ;;  %v2937_v61 = vld [vmem:[#allocation2 + $0x380] ss:$16 sps:$4 sm:$0xff]   ;;  %4443 = vst [vmem:[#allocation10_spill] sm:$0xff] %v3383_v33 }
  0x40   : > { %2843 = vset.pattern.permute.xlu0 %v4396_v1  ;;  %2139 = vmatprep.subr.bf16.mxu1 %v2904_v37  ;;  %v2938_v62 = vld [vmem:[#allocation2 + $0x164] ss:$16 sps:$4 sm:$0xff]   ;;  %v2943_v5 = vld [vmem:[#allocation2 + $0x360] ss:$16 sps:$4 sm:$0xff]   ;;  %4444 = vst [vmem:[#allocation11_spill] sm:$0xff] %v3385_v34 }
  0x41   : > { %493 = vperm.xlu0 %2843, %v3286_v21   ;;  %2027 = vmatpush1.bf16.msra.mxu0 %v2906_v38  ;;  %v2940_v63 = vld [vmem:[#allocation2 + $0x364] ss:$16 sps:$4 sm:$0xff]   ;;  %v2948_v7 = vld [vmem:[#allocation2 + $0x140] ss:$16 sps:$4 sm:$0xff]  }
  0x42   : > { %249 = vperm.xlu1 %2830, %v3265_v3   ;;  %2028 = vmatprep.subr.bf16.mxu0 %v2908_v40  ;;  %v2946_v6 = vld [vmem:[#allocation2 + $0x344] ss:$16 sps:$4 sm:$0xff]   ;;  %v2949_v9 = vld [vmem:[#allocation2 + $0x340] ss:$16 sps:$4 sm:$0xff]  }
  0x43   : > { %2140 = vmatpush1.bf16.msra.mxu1 %v2907_v41  ;;  %v2950_v8 = vld [vmem:[#allocation2 + $0x124] ss:$16 sps:$4 sm:$0xff]   ;;  %v2954_v12 = vld [vmem:[#allocation2 + $0x120] ss:$16 sps:$4 sm:$0xff]  }
  0x44   : > { %2141 = vmatprep.subr.bf16.mxu1 %v2910_v42  ;;  %v2952_v10 = vld [vmem:[#allocation2 + $0x324] ss:$16 sps:$4 sm:$0xff]   ;;  %v2955_v16 = vld [vmem:[#allocation2 + $0x320] ss:$16 sps:$4 sm:$0xff]   ;;  %v2964_v42 = vld [vmem:[#allocation2 + $0xec] ss:$16 sps:$4 sm:$0xff]  }
  0x45   : > { %505 = vperm.xlu0 %2843, %v3295_v31   ;;  %2029 = vmatpush1.bf16.msra.mxu0 %v2912_v43  ;;  %v220_v14 = vld [vmem:[%s3257_s13 + $0x30] sm:$0xff]  ;;  %v2628_v36 = vld [vmem:[%s4387_s1 + $0x1] ss:$4 sm:$0xf] }
  0x46   : > { %2831 = vset.pattern.permute.xlu1 %v4396_v1  ;;  %2030 = vmatprep.subr.bf16.mxu0 %v2914_v44  ;;  %v2956_v15 = vld [vmem:[#allocation2 + $0x104] ss:$16 sps:$4 sm:$0xff]   ;;  %v2960_v17 = vld [vmem:[#allocation2 + $0x100] ss:$16 sps:$4 sm:$0xff]   ;;  %v3404_v43 = vrot.slane %v2628_v36, %v3381_v32  ;;  %v3407_v44 = vrot.slane %v2628_v36, %v3383_v33 }
  0x47   : > { %497 = vperm.xlu1 %2831, %v3265_v3   ;;  %2142 = vmatpush1.bf16.msra.mxu1 %v2913_v45  ;;  %v2961_v20 = vld [vmem:[#allocation2 + $0x300] ss:$16 sps:$4 sm:$0xff]  }
  0x48   : > { %2143 = vmatprep.subr.bf16.mxu1 %v2916_v46  ;;  %v3351_v22 = vld [vmem:[%s3257_s13 + $0x70] sm:$0xff]  ;;  %v2629_v38 = vld [vmem:[%s4387_s1 + $0x2] ss:$4 sm:$0xf]  ;;  %v3413_v46 = vrot.slane %v2628_v36, %v3385_v34 }
  0x49   : > { %517 = vperm.xlu0 %2843, %v3299_v35   ;;  %2031 = vmatpush2.bf16.msra.mxu0 %v2918_v47  ;;  %v2630_v41 = vld [vmem:[%s4387_s1 + $0x3] ss:$4 sm:$0xf]  ;;  %v231_v45 = vld [vmem:[%s4387_s1] ss:$4 sm:$0xf] }
  0x4a   : > { %2032 = vmatprep.subr.bf16.mxu0 %v2920_v48  ;;  %v3419_v48 = vrot.slane %v2629_v38, %v3381_v32 }
  0x4b   : > { %2832 = vset.pattern.permute.xlu1 %v4394_v0  ;;  %2144 = vmatpush2.bf16.msra.mxu1 %v2919_v49  ;;  %v3422_v49 = vrot.slane %v2629_v38, %v3383_v33 }
  0x4c   : > { %708 = vperm.xlu1 %2832, %v3286_v21   ;;  %2145 = vmatprep.subr.bf16.mxu1 %v2922_v50 }
  0x4d   : > { %529 = vperm.xlu0 %2843, %v3304_v39   ;;  %2033 = vmatpush2.bf16.msra.mxu0 %v2924_v51  ;;  %v230_v51 = vld [vmem:[%s4389_s3] ss:$2 sm:$0xf] }
  0x4e   : > { %2034 = vmatprep.subr.bf16.mxu0 %v2926_v52  ;;  %v3430_v52 = vrot.slane %v2629_v38, %v3385_v34 }
  0x4f   : > { %2146 = vmatpush2.bf16.msra.mxu1 %v2925_v53 }
  0x50   : > { %2834 = vset.pattern.permute.xlu1 %v4392_v11  ;;  %2147 = vmatprep.subr.bf16.mxu1 %v2928_v55  ;;  %v3439_v55 = vrot.slane %v2630_v41, %v3383_v33 }
  0x51   : > { %2850 = vset.pattern.permute.xlu0 %v4391_v25  ;;  %923 = vperm.xlu1 %2834, %v3286_v21   ;;  %v3339_v21 = vld [vmem:[%s3257_s13 + $0x60] sm:$0xff] }
  0x52   : > { %234 = vperm.xlu0 %2850, %v3260_v2   ;;  %2035 = vmatpush2.bf16.msra.mxu0 %v2930_v54  ;;  %v2942_v2 = vld [vmem:[#allocation2 + $0x160] ss:$16 sps:$4 sm:$0xff]   ;;  %v3436_v54 = vrot.slane %v2630_v41, %v3381_v32  ;;  %4447 = vst [vmem:[#allocation14_spill] sm:$0xff] %v3439_v55 }
  0x53   : > { %2036 = vmatprep.subr.bf16.mxu0 %v2932_v56  ;;  %2148 = vmatpush2.bf16.msra.mxu1 %v2931_v57  ;;  %v3443_v56 = vrot.slane %v2630_v41, %v3385_v34 }
  0x54   : > { %2149 = vmatprep.subr.bf16.mxu1 %v2934_v58  ;;  %4446 = vst [vmem:[#allocation13_spill] sm:$0xff] %v3436_v54  ;;  %v3450_v58 = vrot.slane %v231_v45, %v3381_v32 }
  0x55   : > { %927 = vperm.xlu1 %2834, %v3265_v3   ;;  %v2944_v3 = vld [vmem:[#allocation2 + $0x144] ss:$16 sps:$4 sm:$0xff]   ;;  %4448 = vst [vmem:[#allocation15_spill] sm:$0xff] %v3443_v56 }
  0x56   : > { %239 = vperm.xlu0 %2850, %v3268_v4   ;;  %2037 = vmatpush2.bf16.msra.mxu0 %v2936_v59  ;;  %v3326_v4 = vld [vmem:[%s3257_s13 + $0x68] sm:$0xff]  ;;  %v3453_v59 = vrot.slane %v231_v45, %v3383_v33  ;;  %s2545_s13 = sshll.u32 %s4195_s11, 4  ;;  %s4340_s13 = int_to_ptr.vmem [resolvable:$true] %s2545_s13 }
  0x57   : > { %2038 = vmatprep.subr.bf16.mxu0 %v2938_v62  ;;  %2150 = vmatpush2.bf16.msra.mxu1 %v2937_v61  ;;  %v3456_v61 = vrot.slane %v231_v45, %v3385_v34  ;;  %s3084_s23 = scalar_lea.vmem %s4340_s13, 8192  ;;  %p3091_p11 = scmp.lt.s32.totalorder %s4340_s13, %s3089_s28 }
  0x58   : > { %2151 = vmatprep.subr.bf16.mxu1 %v2940_v63  ;;  %v3462_v63 = vrot.slane %v230_v51, %v3381_v32  ;;  %p3085_p8 = scmp.ne.s32.totalorder %s4340_s13, %s3084_s23  ;;  %p3092_p12 = scmp.lt.s32.totalorder %s3090_s29, %s3084_s23 }
  0x59   : > { %2835 = vset.pattern.permute.xlu1 %v4391_v25 }
  0x5a   : > { %259 = vperm.xlu1 %2835, %v3295_v31   ;;  %254 = vperm.xlu0 %2850, %v3277_v13   ;;  %4451 = vst [vmem:[#allocation18_spill] sm:$0xff] %v3462_v63  ;;  %p3086_p9 = pnand %p3085_p8, %p3223_p5  ;;  %p3093_p13 = por %p3092_p12, %p3091_p11 }
  0x5b   : > { %2039 = vmatpush2.bf16.msra.mxu0 %v2942_v2  ;;  %2152 = vmatpush2.bf16.msra.mxu1 %v2943_v5  ;;  %v3465_v2 = vrot.slane %v230_v51, %v3383_v33  ;;  %v3474_v5 = vrot.slane %v230_v51, %v3385_v34  ;;  %v4470_v33 = vmov 1  }
  0x5c   : > { %2040 = vmatprep.subr.bf16.mxu0 %v2944_v3  ;;  %2153 = vmatprep.subr.bf16.mxu1 %v2946_v6  ;;  %p3087_p10 = pneg %p3086_p9 }
  0x5e   : > { %2836 = vset.pattern.permute.xlu1 %v4396_v1  ;;  %269 = vperm.xlu0 %2850, %v3283_v19   ;;  %p3094_p0 = pnand %p3093_p13, %p3087_p10 }
  0x5f   : > { %501 = vperm.xlu1 %2836, %v3277_v13   ;;  %2041 = vmatpush2.bf16.msra.mxu0 %v2948_v7 }
  0x60   : > { %2042 = vmatprep.subr.bf16.mxu0 %v2950_v8  ;;  %2154 = vmatpush2.bf16.msra.mxu1 %v2949_v9 }
  0x61   : > { %2155 = vmatprep.subr.bf16.mxu1 %v2952_v10 }
  0x62   : > { %284 = vperm.xlu0 %2850, %v3320_v60  }
  0x63   : > { %2837 = vset.pattern.permute.xlu1 %v4394_v0  ;;  %2043 = vmatpush2.bf16.msra.mxu0 %v2954_v12 }
  0x64   : > { %716 = vperm.xlu1 %2837, %v3277_v13   ;;  %v2958_v13 = vld [vmem:[#allocation2 + $0x304] ss:$16 sps:$4 sm:$0xff]   ;;  %2044 = vmatprep.subr.bf16.mxu0 %v2956_v15 }
  0x65   : > { %2156 = vmatpush2.bf16.msra.mxu1 %v2955_v16 }
  0x66   : > { %299 = vperm.xlu0 %2850, %v3326_v4   ;;  %2157 = vmatprep.subr.bf16.mxu1 %v2958_v13 }
  0x67   : > { %2045 = vmatpush2.bf16.msra.mxu0 %v2960_v17 }
  0x68   : > { %720 = vperm.xlu1 %2837, %v3295_v31   ;;  %2240 = vmatprep.subr.bf16.mxu0 %v2964_v42 }
  0x69   : > { %2158 = vmatpush2.bf16.msra.mxu1 %v2961_v20 }
  0x6a   : > { %2854 = vset.pattern.permute.xlu0 %v4394_v0 }
  0x6b   : > { %724 = vperm.xlu0 %2854, %v220_v14  }
  0x6c   : > { %2838 = vset.pattern.permute.xlu1 %v4392_v11 }
  0x6d   : > { %935 = vperm.xlu1 %2838, %v3295_v31  }
  0x6f   : > { %736 = vperm.xlu0 %2854, %v223_v18  }
  0x71   : > { %2839 = vset.pattern.permute.xlu1 %v4391_v25 }
  0x72   : > { %264 = vperm.xlu1 %2839, %v220_v14  }
  0x73   : > { %748 = vperm.xlu0 %2854, %v3339_v21  }
  0x76   : > { %2840 = vset.pattern.permute.xlu1 %v4396_v1 }
  0x77   : > { %509 = vperm.xlu1 %2840, %v220_v14   ;;  %2856 = vset.pattern.permute.xlu0 %v4392_v11 }
  0x78   : > { %955 = vperm.xlu0 %2856, %v3320_v60  }
  0x7b   : > { %513 = vperm.xlu1 %2840, %v3283_v19  }
  0x7c   : > { %967 = vperm.xlu0 %2856, %v3326_v4  }
  0x7f   : > { %2841 = vset.pattern.permute.xlu1 %v4394_v0 }
  0x80   : > { %728 = vperm.xlu1 %2841, %v3283_v19   ;;  %2860 = vset.pattern.permute.xlu0 %v4396_v1 }
  0x81   : > { %541 = vperm.xlu0 %2860, %v3351_v22  }
  0x84   : > { %2842 = vset.pattern.permute.xlu1 %v4392_v11 }
  0x85   : > { %939 = vperm.xlu1 %2842, %v220_v14   ;;  %2863 = vset.pattern.permute.xlu0 %v4394_v0  ;;  %v2967_v14 = vld [vmem:[#allocation2 + $0x2ec] ss:$16 sps:$4 sm:$0xff]  }
  0x86   : > { %760 = vperm.xlu0 %2863, %v3357_v23   ;;  %2353 = vmatprep.subr.bf16.mxu1 %v2967_v14 }
  0x89   : > { %2844 = vset.pattern.permute.xlu1 %v4391_v25 }
  0x8a   : > { %274 = vperm.xlu1 %2844, %v3299_v35   ;;  %2865 = vset.pattern.permute.xlu0 %v4392_v11 }
  0x8e   : > { %279 = vperm.xlu1 %2844, %v223_v18  }
  0x92   : > { %2845 = vset.pattern.permute.xlu1 %v4396_v1 }
  0x93   : > { %521 = vperm.xlu1 %2845, %v223_v18  }
  0x97   : > { %2846 = vset.pattern.permute.xlu1 %v4394_v0 }
  0x98   : > { %732 = vperm.xlu1 %2846, %v3299_v35  }
  0x9c   : > { %2847 = vset.pattern.permute.xlu1 %v4392_v11 }
  0x9d   : > { %947 = vperm.xlu1 %2847, %v3299_v35   ;;  %v3387_v35 = vsub.s32 3, %v314_v29 }
  0x9f   : > { %4445 = vst [vmem:[#allocation12_spill] sm:$0xff] %v3387_v35  ;;  %v3416_v47 = vrot.slane %v2628_v36, %v3387_v35  ;;  %v3433_v53 = vrot.slane %v2629_v38, %v3387_v35  ;;  %v3446_v57 = vrot.slane %v2630_v41, %v3387_v35  ;;  %v3459_v62 = vrot.slane %v231_v45, %v3387_v35 }
  0xa0   : > { %v3477_v6 = vrot.slane %v230_v51, %v3387_v35 }
  0xa1   : > { %951 = vperm.xlu1 %2847, %v223_v18   ;;  %4449 = vst [vmem:[#allocation16_spill] sm:$0xff] %v3446_v57  ;;  %4450 = vst [vmem:[#allocation17_spill] sm:$0xff] %v3459_v62 }
  0xa5   : > { %2848 = vset.pattern.permute.xlu1 %v4391_v25 }
  0xa6   : > { %289 = vperm.xlu1 %2848, %v3304_v39   ;;  %v486_v19 = vpop.permute.xlu1 %485  ;;  %v701_v24 = vpop.permute.xlu0 %700 }
  0xa7   : > { %v3471_v3 = vmul.f32 %v3407_v44, %v486_v19  ;;  %v3480_v7 = vmul.f32 %v3413_v46, %v486_v19  ;;  %v3483_v8 = vmul.f32 %v3416_v47, %v486_v19  ;;  %v3486_v9 = vmul.f32 %v3419_v48, %v701_v24 }
  0xa8   : > { %v3489_v10 = vmul.f32 %v3422_v49, %v701_v24  ;;  %v3492_v15 = vmul.f32 %v3430_v52, %v701_v24  ;;  %v3495_v16 = vmul.f32 %v3433_v53, %v701_v24 }
  0xa9   : > { %4452 = vst [vmem:[#allocation19_spill] sm:$0xff] %v3486_v9  ;;  %v4482_v9 = vmov 2  }
  0xaa   : > { %2849 = vset.pattern.permute.xlu1 %v4396_v1  ;;  %v490_v27 = vpop.permute.xlu1 %489  ;;  %v3372_v28 = vpop.permute.xlu0 %712  ;;  %4453 = vst [vmem:[#allocation20_spill] sm:$0xff] %v3492_v15  ;;  %4454 = vst [vmem:[#allocation21_spill] sm:$0xff] %v3495_v16 }
  0xab   : > { %525 = vperm.xlu1 %2849, %v3320_v60   ;;  %v3498_v13 = vmul.f32 %v3404_v43, %v490_v27  ;;  %v3501_v17 = vmul.f32 %v3407_v44, %v490_v27  ;;  %v3505_v20 = vmul.f32 %v3413_v46, %v490_v27  ;;  %v3512_v26 = vmul.f32 %v3419_v48, %v3372_v28 }
  0xac   : > { %v3516_v24 = vmul.f32 %v3422_v49, %v3372_v28  ;;  %v3521_v29 = vmul.f32 %v3430_v52, %v3372_v28  ;;  %v3525_v36 = vmul.f32 %v3433_v53, %v3372_v28 }
  0xad   : > { %4455 = vst [vmem:[#allocation22_spill] sm:$0xff] %v3498_v13  ;;  %4456 = vst [vmem:[#allocation23_spill] sm:$0xff] %v3501_v17 }
  0xae   : > { %4457 = vst [vmem:[#allocation24_spill] sm:$0xff] %v3505_v20 }
  0xaf   : > { %2851 = vset.pattern.permute.xlu1 %v4394_v0  ;;  %v3376_v30 = vpop.permute.xlu1 %704  ;;  %v3378_v31 = vpop.permute.xlu0 %919 }
  0xb0   : > { %740 = vperm.xlu1 %2851, %v3320_v60   ;;  %v3533_v38 = vmul.f32 %v3422_v49, %v3376_v30  ;;  %v3537_v41 = vmul.f32 %v3430_v52, %v3376_v30  ;;  %v3541_v42 = vmul.f32 %v3433_v53, %v3376_v30  ;;  %v3545_v28 = vmul.f32 %v3436_v54, %v3378_v31 }
  0xb1   : > { %v3554_v14 = vmul.f32 %v3443_v56, %v3378_v31 }
  0xb2   : > { %4460 = vst [vmem:[#allocation27_spill] sm:$0xff] %v3533_v38  ;;  %4461 = vst [vmem:[#allocation28_spill] sm:$0xff] %v3537_v41 }
  0xb3   : > { %v3392_v37 = vpop.permute.xlu0 %931  ;;  %4462 = vst [vmem:[#allocation29_spill] sm:$0xff] %v3541_v42  ;;  %4463 = vst [vmem:[#allocation30_spill] sm:$0xff] %v3545_v28 }
  0xb4   : > { %744 = vperm.xlu1 %2851, %v3304_v39   ;;  %v3398_v40 = vpop.permute.xlu1 %915  ;;  %4465 = vst [vmem:[#allocation32_spill] sm:$0xff] %v3554_v14  ;;  %v3563_v0 = vmul.f32 %v3436_v54, %v3392_v37  ;;  %v3567_v1 = vmul.f32 %v3439_v55, %v3392_v37  ;;  %v3571_v35 = vmul.f32 %v3443_v56, %v3392_v37 }
  0xb5   : > { %v3577_v32 = vmul.f32 %v3446_v57, %v3392_v37  ;;  %v3594_v14 = vmul.f32 %v3446_v57, %v3398_v40 }
  0xb6   : > { %4467 = vst [vmem:[#allocation34_spill] sm:$0xff] %v3563_v0  ;;  %4468 = vst [vmem:[#allocation35_spill] sm:$0xff] %v3567_v1  ;;  %v3581_v0 = vmul.f32 %v3436_v54, %v3398_v40  ;;  %v3585_v1 = vmul.f32 %v3439_v55, %v3398_v40 }
  0xb7   : > { %v3424_v50 = vpop.permute.xlu0 %943  ;;  %4469 = vst [vmem:[#allocation36_spill] sm:$0xff] %v3571_v35  ;;  %4471 = vst [vmem:[#allocation37_spill] sm:$0xff] %v3577_v32  ;;  %v3589_v35 = vmul.f32 %v3443_v56, %v3398_v40 }
  0xb8   : > { %2852 = vset.pattern.permute.xlu1 %v4392_v11  ;;  %v3558_v11 = vmul.f32 %v3446_v57, %v3378_v31  ;;  %4472 = vst [vmem:[#allocation38_spill] sm:$0xff] %v3581_v0  ;;  %4473 = vst [vmem:[#allocation39_spill] sm:$0xff] %v3585_v1  ;;  %v3598_v37 = vmul.f32 %v3436_v54, %v3424_v50  ;;  %v3623_v42 = vmul.f32 %v3443_v56, %v3424_v50 }
  0xb9   : > { %959 = vperm.xlu1 %2852, %v3304_v39   ;;  %v245_v60 = vpop.permute.xlu1 %244  ;;  %v3468_v39 = vmul.f32 %v3404_v43, %v486_v19  ;;  %v3508_v19 = vmul.f32 %v3416_v47, %v490_v27  ;;  %v3529_v27 = vmul.f32 %v3419_v48, %v3376_v30  ;;  %4474 = vst [vmem:[#allocation40_spill] sm:$0xff] %v3589_v35  ;;  %4475 = vst [vmem:[#allocation41_spill] sm:$0xff] %v3594_v14 }
  0xba   : > { %v341_v45 = vmul.f32 %v3450_v58, %v245_v60  ;;  %4466 = vst [vmem:[#allocation33_spill] sm:$0xff] %v3558_v11  ;;  %v342_v30 = vmul.f32 %v3453_v59, %v245_v60  ;;  %v343_v34 = vmul.f32 %v3456_v61, %v245_v60  ;;  %4476 = vst [vmem:[#allocation42_spill] sm:$0xff] %v3598_v37 }
  0xbb   : > { %4458 = vst [vmem:[#allocation25_spill] sm:$0xff] %v3508_v19  ;;  %4459 = vst [vmem:[#allocation26_spill] sm:$0xff] %v3529_v27  ;;  %v344_v32 = vmul.f32 %v3459_v62, %v245_v60 }
  0xbc   : > { %v494_v12 = vpop.permute.xlu0 %493  ;;  %v426_v28 = vadd.f32 %v3462_v63, %v341_v45  ;;  %v427_v0 = vadd.f32 %v3465_v2, %v342_v30  ;;  %v428_v40 = vadd.f32 %v3474_v5, %v343_v34  ;;  %v3619_v34 = vmul.f32 %v3439_v55, %v3424_v50  ;;  %4479 = vst [vmem:[#allocation45_spill] sm:$0xff] %v3623_v42 }
  0xbd   : > { %2853 = vset.pattern.permute.xlu1 %v4391_v25  ;;  %v250_v18 = vpop.permute.xlu1 %249  ;;  %v3550_v25 = vmul.f32 %v3439_v55, %v3378_v31  ;;  %v578_v37 = vmul.f32 %v3407_v44, %v494_v12  ;;  %v579_v60 = vmul.f32 %v3413_v46, %v494_v12  ;;  %v429_v1 = vadd.f32 %v3477_v6, %v344_v32 }
  0xbe   : > { %294 = vperm.xlu1 %2853, %v3339_v21   ;;  %v345_v35 = vmul.f32 %v3450_v58, %v250_v18  ;;  %v346_v27 = vmul.f32 %v3453_v59, %v250_v18  ;;  %v348_v11 = vmul.f32 %v3459_v62, %v250_v18  ;;  %v347_v45 = vmul.f32 %v3456_v61, %v250_v18 }
  0xbf   : > { %4464 = vst [vmem:[#allocation31_spill] sm:$0xff] %v3550_v25  ;;  %v577_v25 = vmul.f32 %v3404_v43, %v494_v12  ;;  %4478 = vst [vmem:[#allocation44_spill] sm:$0xff] %v3619_v34  ;;  %v580_v18 = vmul.f32 %v3416_v47, %v494_v12  ;;  %v3635_v34 = vmul.f32 %v3446_v57, %v3424_v50 }
  0xc0   : > { %v506_v51 = vpop.permute.xlu0 %505  ;;  %v430_v20 = vadd.f32 %v3462_v63, %v345_v35  ;;  %v431_v15 = vadd.f32 %v3465_v2, %v346_v27  ;;  %v433_v19 = vadd.f32 %v3477_v6, %v348_v11  ;;  %v642_v42 = vadd.f32 %v578_v37, %v427_v0 }
  0xc1   : > { %4481 = vst [vmem:[#allocation47_spill] sm:$0xff] %v3635_v34  ;;  %v641_v23 = vadd.f32 %v577_v25, %v426_v28  ;;  %v643_v13 = vadd.f32 %v579_v60, %v428_v40  ;;  %v432_v32 = vadd.f32 %v3474_v5, %v347_v45  ;;  %v644_v35 = vadd.f32 %v580_v18, %v429_v1 }
  0xc2   : > { %2855 = vset.pattern.permute.xlu1 %v4470_v33  ;;  %v498_v31 = vpop.permute.xlu1 %497  ;;  %v3640_v27 = vmul.f32 %v3404_v43, %v506_v51  ;;  %v3643_v11 = vmul.f32 %v3407_v44, %v506_v51  ;;  %v3648_v25 = vmul.f32 %v3413_v46, %v506_v51  ;;  %v4485_v18 = vmov 3  }
  0xc3   : > { %533 = vperm.xlu1 %2855, %v3339_v21   ;;  %v582_v30 = vmul.f32 %v3407_v44, %v498_v31  ;;  %v584_v33 = vmul.f32 %v3416_v47, %v498_v31  ;;  %v583_v17 = vmul.f32 %v3413_v46, %v498_v31 }
  0xc4   : > { %v3602_v41 = vpop.permute.xlu0 %517 }
  0xc5   : > { %4477 = vst [vmem:[#allocation43_spill] sm:$0xff] %v3602_v41  ;;  %v581_v41 = vmul.f32 %v3404_v43, %v498_v31  ;;  %v646_v16 = vadd.f32 %v582_v30, %v431_v15  ;;  %v3651_v15 = vmul.f32 %v3416_v47, %v506_v51 }
  0xc7   : > { %537 = vperm.xlu1 %2855, %v3326_v4   ;;  %v709_v14 = vpop.permute.xlu1 %708  ;;  %v645_v12 = vadd.f32 %v581_v41, %v430_v20  ;;  %4483 = vst [vmem:[#allocation48_spill] sm:$0xff] %v3651_v15  ;;  %v3660_v37 = vadd.f32 %v3516_v24, %v646_v16 }
  0xc8   : > { %v3627_v38 = vpop.permute.xlu0 %529  ;;  %v792_v50 = vmul.f32 %v3419_v48, %v709_v14  ;;  %v793_v1 = vmul.f32 %v3422_v49, %v709_v14  ;;  %v794_v40 = vmul.f32 %v3430_v52, %v709_v14 }
  0xc9   : > { %4480 = vst [vmem:[#allocation46_spill] sm:$0xff] %v3627_v38  ;;  %v648_v38 = vadd.f32 %v584_v33, %v433_v19  ;;  %v647_v33 = vadd.f32 %v583_v17, %v432_v32  ;;  %v3666_v17 = vadd.f32 %v3512_v26, %v645_v12 }
  0xca   : > { %v856_v60 = vadd.f32 %v792_v50, %v641_v23 }
  0xcb   : > { %2857 = vset.pattern.permute.xlu1 %v4482_v9  ;;  %v3663_v51 = vadd.f32 %v3525_v36, %v648_v38  ;;  %4484 = vst [vmem:[#allocation49_spill] sm:$0xff] %v3666_v17  ;;  %v857_v38 = vadd.f32 %v793_v1, %v642_v42  ;;  %v858_v17 = vadd.f32 %v794_v40, %v643_v13  ;;  %v4486_v42 = vmov 0  }
  0xcc   : > { %752 = vperm.xlu1 %2857, %v3326_v4   ;;  %v924_v0 = vpop.permute.xlu1 %923  ;;  %v795_v4 = vmul.f32 %v3433_v53, %v709_v14 }
  0xcd   : > { %v235_v20 = vpop.permute.xlu0 %234  ;;  %v1008_v16 = vmul.f32 %v3439_v55, %v924_v0  ;;  %v1010_v24 = vmul.f32 %v3446_v57, %v924_v0 }
  0xce   : > { %v333_v19 = vmul.f32 %v3450_v58, %v235_v20  ;;  %v334_v41 = vmul.f32 %v3453_v59, %v235_v20  ;;  %v335_v28 = vmul.f32 %v3456_v61, %v235_v20  ;;  %v336_v31 = vmul.f32 %v3459_v62, %v235_v20 }
  0xcf   : > { %v1007_v20 = vmul.f32 %v3436_v54, %v924_v0  ;;  %v859_v50 = vadd.f32 %v795_v4, %v644_v35  ;;  %v3690_v35 = vadd.f32 %v1008_v16, %v857_v38  ;;  %v4490_v38 = vld [vmem:[#allocation21_spill] sm:$0xff] }
  0xd0   : > { %v418_v45 = vadd.f32 %v3462_v63, %v333_v19  ;;  %v419_v30 = vadd.f32 %v3465_v2, %v334_v41  ;;  %2858 = vset.pattern.permute.xlu1 %v4485_v18  ;;  %v928_v32 = vpop.permute.xlu1 %927  ;;  %v421_v36 = vadd.f32 %v3477_v6, %v336_v31  ;;  %v420_v23 = vadd.f32 %v3474_v5, %v335_v28 }
  0xd1   : > { %v240_v26 = vpop.permute.xlu0 %239  ;;  %963 = vperm.xlu1 %2858, %v3339_v21   ;;  %v1009_v19 = vmul.f32 %v3443_v56, %v924_v0  ;;  %v3686_v21 = vadd.f32 %v3521_v29, %v647_v33  ;;  %v3692_v0 = vadd.f32 %v1010_v24, %v859_v50  ;;  %v3694_v4 = vadd.f32 %v1007_v20, %v856_v60 }
  0xd2   : > { %v337_v14 = vmul.f32 %v3450_v58, %v240_v26  ;;  %v338_v12 = vmul.f32 %v3453_v59, %v240_v26  ;;  %v339_v41 = vmul.f32 %v3456_v61, %v240_v26  ;;  %v340_v34 = vmul.f32 %v3459_v62, %v240_v26 }
  0xd3   : > { %v633_v31 = vadd.f32 %v3468_v39, %v418_v45  ;;  %v634_v15 = vadd.f32 %v3471_v3, %v419_v30  ;;  %v636_v28 = vadd.f32 %v3483_v8, %v421_v36  ;;  %4487 = vst [vmem:[#allocation50_spill] sm:$0xff] %v3694_v4  ;;  %v635_v13 = vadd.f32 %v3480_v7, %v420_v23 }
  0xd4   : > { %v422_v39 = vadd.f32 %v3462_v63, %v337_v14  ;;  %v423_v3 = vadd.f32 %v3465_v2, %v338_v12  ;;  %v425_v29 = vadd.f32 %v3477_v6, %v340_v34  ;;  %v3702_v33 = vmul.f32 %v3436_v54, %v928_v32  ;;  %v4489_v34 = vld [vmem:[#allocation19_spill] sm:$0xff]  ;;  %v4492_v12 = vld [vmem:[#allocation8_spill] sm:$0xff] }
  0xd5   : > { %2859 = vset.pattern.permute.xlu1 %v4486_v42  ;;  %v260_v1 = vpop.permute.xlu1 %259  ;;  %v1012_v8 = vmul.f32 %v3439_v55, %v928_v32  ;;  %v424_v40 = vadd.f32 %v3474_v5, %v339_v41  ;;  %v3706_v45 = vadd.f32 %v1009_v19, %v858_v17  ;;  %v3709_v60 = vmul.f32 %v3443_v56, %v928_v32  ;;  %v255_v30 = vpop.permute.xlu0 %254  ;;  %v4491_v17 = vld [vmem:[#allocation22_spill] sm:$0xff]  ;;  %v4493_v19 = vld [vmem:[#allocation23_spill] sm:$0xff]  ;;  %v4494_v41 = vld [vmem:[#allocation25_spill] sm:$0xff] }
  0xd6   : > { %304 = vperm.xlu1 %2859, %v3351_v22   ;;  %v1014_v7 = vmul.f32 %v3446_v57, %v928_v32  ;;  %v849_v20 = vadd.f32 %v3489_v10, %v634_v15  ;;  %v848_v16 = vadd.f32 %v4489_v34, %v633_v31  ;;  %v353_v24 = vmul.f32 %v3450_v58, %v260_v1  ;;  %v4495_v10 = vld [vmem:[#allocation20_spill] sm:$0xff] }
  0xd7   : > { %4488 = vst [vmem:[#allocation51_spill] sm:$0xff] %v3706_v45  ;;  %v354_v36 = vmul.f32 %v3453_v59, %v260_v1  ;;  %v355_v26 = vmul.f32 %v3456_v61, %v260_v1  ;;  %v851_v23 = vadd.f32 %v4490_v38, %v636_v28  ;;  %v637_v14 = vadd.f32 %v4491_v17, %v422_v39  ;;  %v4496_v31 = vld [vmem:[#allocation24_spill] sm:$0xff]  ;;  %v4497_v39 = vld [vmem:[#allocation27_spill] sm:$0xff]  ;;  %v4499_v45 = vld [vmem:[#allocation29_spill] sm:$0xff] }
  0xd8   : > { %v638_v32 = vadd.f32 %v4493_v19, %v423_v3  ;;  %v640_v42 = vadd.f32 %v4494_v41, %v425_v29  ;;  %v850_v15 = vadd.f32 %v4495_v10, %v635_v13  ;;  %v639_v34 = vadd.f32 %v4496_v31, %v424_v40  ;;  %v4498_v17 = vld [vmem:[#allocation39_spill] sm:$0xff]  ;;  %v4500_v40 = vld [vmem:[#allocation41_spill] sm:$0xff] }
  0xd9   : > { %v356_v56 = vmul.f32 %v3459_v62, %v260_v1  ;;  %v349_v54 = vmul.f32 %v3450_v58, %v255_v30  ;;  %v350_v57 = vmul.f32 %v3453_v59, %v255_v30  ;;  %v351_v28 = vmul.f32 %v3456_v61, %v255_v30 }
  0xda   : > { %309 = vperm.xlu1 %2859, %v4492_v12   ;;  %v502_v50 = vpop.permute.xlu1 %501  ;;  %v853_v38 = vadd.f32 %v4497_v39, %v638_v32  ;;  %v1064_v55 = vadd.f32 %v4498_v17, %v849_v20  ;;  %v855_v3 = vadd.f32 %v4499_v45, %v640_v42  ;;  %v3732_v29 = vadd.f32 %v3462_v63, %v353_v24  ;;  %v4502_v32 = vld [vmem:[#allocation31_spill] sm:$0xff]  ;;  %v4503_v20 = vld [vmem:[#allocation33_spill] sm:$0xff]  ;;  %v4504_v45 = vld [vmem:[#allocation26_spill] sm:$0xff] }
  0xdb   : > { %v3735_v13 = vadd.f32 %v3465_v2, %v354_v36  ;;  %v3738_v1 = vadd.f32 %v3474_v5, %v355_v26  ;;  %v1066_v19 = vadd.f32 %v4500_v40, %v851_v23  ;;  %v352_v41 = vmul.f32 %v3459_v62, %v255_v30  ;;  %v4505_v17 = vld [vmem:[#allocation38_spill] sm:$0xff]  ;;  %v4506_v40 = vld [vmem:[#allocation28_spill] sm:$0xff] }
  0xdc   : > { %v4501_v10 = vmov 1   ;;  %v1068_v31 = vadd.f32 %v4502_v32, %v853_v38  ;;  %v1070_v39 = vadd.f32 %v4503_v20, %v855_v3  ;;  %v852_v42 = vadd.f32 %v4504_v45, %v637_v14  ;;  %v4507_v45 = vld [vmem:[#allocation30_spill] sm:$0xff]  ;;  %v4508_v62 = vld [vmem:[#allocation40_spill] sm:$0xff] }
  0xdd   : > { %v3747_v24 = vadd.f32 %v3477_v6, %v356_v56  ;;  %v434_v36 = vadd.f32 %v3462_v63, %v349_v54  ;;  %v1063_v23 = vadd.f32 %v4505_v17, %v848_v16  ;;  %v854_v30 = vadd.f32 %v4506_v40, %v639_v34 }
  0xde   : > { %2861 = vset.pattern.permute.xlu1 %v4501_v10  ;;  %v435_v10 = vadd.f32 %v3465_v2, %v350_v57  ;;  %v436_v38 = vadd.f32 %v3474_v5, %v351_v28  ;;  %v1128_v32 = vmax.f32 %v1064_v55, 0.0  ;;  %v1130_v3 = vmax.f32 %v1066_v19, 0.0  ;;  %v4511_v55 = vld [vmem:[#allocation32_spill] sm:$0xff] }
  0xdf   : > { %545 = vperm.xlu1 %2861, %v4492_v12   ;;  %v717_v26 = vpop.permute.xlu1 %716  ;;  %v1132_v20 = vmax.f32 %v1068_v31, 0.0  ;;  %v1134_v14 = vmax.f32 %v1070_v39, 0.0  ;;  %v1067_v56 = vadd.f32 %v4507_v45, %v852_v42  ;;  %v1065_v4 = vadd.f32 %v4508_v62, %v850_v15 }
  0xe0   : > { %v437_v54 = vadd.f32 %v3477_v6, %v352_v41  ;;  %v585_v63 = vmul.f32 %v3404_v43, %v502_v50  ;;  %v586_v16 = vmul.f32 %v3407_v44, %v502_v50  ;;  %v1127_v17 = vmax.f32 %v1063_v23, 0.0 }
  0xe1   : > { %v3760_v34 = vpack.c.bf16 %v1132_v20, %v1128_v32  ;;  %v3762_v57 = vpack.c.bf16 %v1134_v14, %v1130_v3  ;;  %v1131_v28 = vmax.f32 %v1067_v56, 0.0  ;;  %v1069_v19 = vadd.f32 %v4511_v55, %v854_v30  ;;  %v2962_v56 = vld [vmem:[#allocation2 + $0xe8] ss:$16 sps:$4 sm:$0xff]  }
  0xe2   : > { %v587_v39 = vmul.f32 %v3413_v46, %v502_v50  ;;  %v588_v62 = vmul.f32 %v3416_v47, %v502_v50  ;;  %v1076_v15 = vadd.f32 %v1012_v8, %v3660_v37  ;;  %v1078_v41 = vadd.f32 %v1014_v7, %v3663_v51  ;;  %v270_v8 = vpop.permute.xlu0 %269 }
  0xe3   : > { %4509 = vst [vmem:[#allocation19_spill] sm:$0xff] %v3760_v34  ;;  %4510 = vst [vmem:[#allocation21_spill] sm:$0xff] %v3762_v57  ;;  %2862 = vset.pattern.permute.xlu1 %v4482_v9  ;;  %v721_v31 = vpop.permute.xlu1 %720  ;;  %v800_v42 = vmul.f32 %v3419_v48, %v717_v26  ;;  %2046 = vmatprep.mubr.bf16.mxu0 %v3760_v34  ;;  %v3774_v23 = vpack.c.bf16 %v1131_v28, %v1127_v17  ;;  %v1129_v9 = vmax.f32 %v1065_v4, 0.0 }
  0xe4   : > { %756 = vperm.xlu1 %2862, %v3351_v22   ;;  %2159 = vmatprep.mubr.bf16.mxu1 %v3762_v57  ;;  %v1133_v40 = vmax.f32 %v1069_v19, 0.0  ;;  %v1136_v30 = vmax.f32 %v3690_v35, 0.0  ;;  %v1140_v32 = vmax.f32 %v1076_v15, 0.0  ;;  %v1138_v50 = vmax.f32 %v3692_v0, 0.0  ;;  %v2965_v19 = vld [vmem:[#allocation2 + $0x2e8] ss:$16 sps:$4 sm:$0xff]  }
  0xe5   : > { %4512 = vst [vmem:[#allocation22_spill] sm:$0xff] %v3774_v23  ;;  %v1142_v37 = vmax.f32 %v1078_v41, 0.0  ;;  %v801_v51 = vmul.f32 %v3422_v49, %v717_v26  ;;  %v802_v7 = vmul.f32 %v3430_v52, %v717_v26  ;;  %v803_v3 = vmul.f32 %v3433_v53, %v717_v26  ;;  %2047 = vmatmul.mubr.bf16.vlgmr.msra.gmra.mxu0 %v3774_v23  ;;  %v4516_v41 = vld [vmem:[#allocation48_spill] sm:$0xff] }
  0xe6   : > { %v3782_v20 = vpack.c.bf16 %v1133_v40, %v1129_v9  ;;  %v649_v14 = vadd.f32 %v585_v63, %v434_v36  ;;  %v3784_v4 = vpack.c.bf16 %v1140_v32, %v1136_v30  ;;  %v804_v35 = vmul.f32 %v3419_v48, %v721_v31  ;;  %v2970_v63 = vld [vmem:[#allocation2 + $0xcc] ss:$16 sps:$4 sm:$0xff]   ;;  %v3815_v9 = vpop.permute.xlu0 %284  ;;  %2241 = vmatpush1.bf16.msra.mxu0 %v2962_v56  ;;  %v2968_v40 = vld [vmem:[#allocation2 + $0xc8] ss:$16 sps:$4 sm:$0xff]   ;;  %v4521_v56 = vld [vmem:[#allocation14_spill] sm:$0xff] }
  0xe7   : > { %v3786_v45 = vpack.c.bf16 %v1142_v37, %v1138_v50  ;;  %v650_v17 = vadd.f32 %v586_v16, %v435_v10  ;;  %v651_v28 = vadd.f32 %v587_v39, %v436_v38  ;;  %v652_v55 = vadd.f32 %v588_v62, %v437_v54  ;;  %v2973_v10 = vld [vmem:[#allocation2 + $0x2cc] ss:$16 sps:$4 sm:$0xff]   ;;  %2242 = vmatprep.subr.bf16.mxu0 %v2970_v63 }
  0xe8   : > { %4513 = vst [vmem:[#allocation8_spill] sm:$0xff] %v3782_v20  ;;  %4514 = vst [vmem:[#allocation23_spill] sm:$0xff] %v3784_v4  ;;  %2864 = vset.pattern.permute.xlu1 %v4485_v18  ;;  %v3790_v0 = vpop.permute.xlu1 %935  ;;  %2160 = vmatmul.mubr.bf16.vlgmr.msra.gmra.mxu1 %v3782_v20  ;;  %v805_v26 = vmul.f32 %v3422_v49, %v721_v31  ;;  %v3794_v36 = vadd.f32 %v800_v42, %v649_v14  ;;  %v4517_v32 = vld [vmem:[#allocation49_spill] sm:$0xff] }
  0xe9   : > { %4515 = vst [vmem:[#allocation25_spill] sm:$0xff] %v3786_v45  ;;  %2056 = vmatprep.mubr.bf16.mxu0 %v3784_v4  ;;  %2169 = vmatprep.mubr.bf16.mxu1 %v3786_v45  ;;  %v653_v18 = vadd.f32 %v3640_v27, %v3732_v29  ;;  %v806_v15 = vmul.f32 %v3430_v52, %v721_v31  ;;  %v2976_v37 = vld [vmem:[#allocation2 + $0xac] ss:$16 sps:$4 sm:$0xff]  }
  0xea   : > { %v865_v38 = vadd.f32 %v801_v51, %v650_v17  ;;  %v3801_v54 = vadd.f32 %v802_v7, %v651_v28  ;;  %v3803_v16 = vadd.f32 %v803_v3, %v652_v55  ;;  %v654_v39 = vadd.f32 %v3643_v11, %v3735_v13  ;;  %971 = vperm.xlu1 %2864, %v3351_v22   ;;  %v4518_v51 = vld [vmem:[#allocation50_spill] sm:$0xff]  ;;  %v4519_v3 = vld [vmem:[#allocation51_spill] sm:$0xff] }
  0xeb   : > { %v655_v62 = vadd.f32 %v3648_v25, %v3738_v1  ;;  %v656_v42 = vadd.f32 %v4516_v41, %v3747_v24  ;;  %v807_v27 = vmul.f32 %v3433_v53, %v721_v31  ;;  %v3813_v29 = vadd.f32 %v804_v35, %v653_v18  ;;  %2354 = vmatpush1.bf16.msra.mxu1 %v2965_v19  ;;  %v2971_v25 = vld [vmem:[#allocation2 + $0x2c8] ss:$16 sps:$4 sm:$0xff]   ;;  %v4522_v19 = vld [vmem:[#allocation16_spill] sm:$0xff] }
  0xec   : > { %v869_v30 = vadd.f32 %v805_v26, %v654_v39  ;;  %v1075_v11 = vadd.f32 %v3702_v33, %v4517_v32  ;;  %v1077_v22 = vadd.f32 %v3709_v60, %v3686_v21  ;;  %v361_v24 = vmul.f32 %v3450_v58, %v270_v8  ;;  %2355 = vmatprep.subr.bf16.mxu1 %v2973_v10  ;;  %v4520_v60 = vld [vmem:[#allocation17_spill] sm:$0xff]  ;;  %v4525_v39 = vld [vmem:[#allocation18_spill] sm:$0xff] }
  0xed   : > { %v265_v13 = vpop.permute.xlu1 %264  ;;  %v3821_v1 = vadd.f32 %v806_v15, %v655_v62  ;;  %v362_v31 = vmul.f32 %v3453_v59, %v270_v8  ;;  %v363_v50 = vmul.f32 %v3456_v61, %v270_v8  ;;  %v1135_v7 = vmax.f32 %v4518_v51, 0.0  ;;  %2243 = vmatpush1.bf16.msra.mxu0 %v2968_v40  ;;  %v2974_v26 = vld [vmem:[#allocation2 + $0xa8] ss:$16 sps:$4 sm:$0xff]  }
  0xee   : > { %v1139_v33 = vmax.f32 %v1075_v11, 0.0  ;;  %v1137_v14 = vmax.f32 %v4519_v3, 0.0  ;;  %v1141_v21 = vmax.f32 %v1077_v22, 0.0  ;;  %975 = vperm.xlu1 %2864, %v4492_v12   ;;  %v364_v35 = vmul.f32 %v4520_v60, %v270_v8  ;;  %v2979_v8 = vld [vmem:[#allocation2 + $0x2ac] ss:$16 sps:$4 sm:$0xff]   ;;  %v3847_v11 = vpop.permute.xlu0 %299  ;;  %2244 = vmatprep.subr.bf16.mxu0 %v2976_v37 }
  0xef   : > { %v1020_v17 = vmul.f32 %v4521_v56, %v3790_v0  ;;  %v357_v28 = vmul.f32 %v3450_v58, %v265_v13  ;;  %v358_v55 = vmul.f32 %v3453_v59, %v265_v13  ;;  %v1022_v63 = vmul.f32 %v4522_v19, %v3790_v0  ;;  %2356 = vmatpush1.bf16.msra.mxu1 %v2971_v25  ;;  %v4526_v41 = vld [vmem:[#allocation13_spill] sm:$0xff] }
  0xf0   : > { %v3836_v18 = vpack.c.bf16 %v1139_v33, %v1135_v7  ;;  %v3838_v15 = vpack.c.bf16 %v1141_v21, %v1137_v14  ;;  %v359_v12 = vmul.f32 %v3456_v61, %v265_v13  ;;  %v871_v10 = vadd.f32 %v807_v27, %v656_v42  ;;  %v2977_v51 = vld [vmem:[#allocation2 + $0x2a8] ss:$16 sps:$4 sm:$0xff]   ;;  %v2982_v7 = vld [vmem:[#allocation2 + $0x8c] ss:$16 sps:$4 sm:$0xff]   ;;  %2357 = vmatprep.subr.bf16.mxu1 %v2979_v8 }
  0xf1   : > { %v3842_v62 = vadd.f32 %v4525_v39, %v361_v24  ;;  %v1019_v32 = vmul.f32 %v4526_v41, %v3790_v0  ;;  %v360_v40 = vmul.f32 %v4520_v60, %v265_v13  ;;  %v3850_v33 = vadd.f32 %v3465_v2, %v362_v31  ;;  %v4527_v42 = vld [vmem:[#allocation15_spill] sm:$0xff]  ;;  %2245 = vmatpush1.bf16.msra.mxu0 %v2974_v26 }
  0xf2   : > { %4523 = vst [vmem:[#allocation20_spill] sm:$0xff] %v3836_v18  ;;  %4524 = vst [vmem:[#allocation24_spill] sm:$0xff] %v3838_v15  ;;  %v510_v22 = vpop.permute.xlu1 %509  ;;  %v3853_v25 = vadd.f32 %v3474_v5, %v363_v50  ;;  %v1021_v27 = vmul.f32 %v4527_v42, %v3790_v0  ;;  %2057 = vmatmul.mubr.bf16.gmra.mxu0 %v3836_v18  ;;  %2170 = vmatmul.mubr.bf16.gmra.mxu1 %v3838_v15  ;;  %v2985_v13 = vld [vmem:[#allocation2 + $0x28c] ss:$16 sps:$4 sm:$0xff]   ;;  %v2980_v50 = vld [vmem:[#allocation2 + $0x88] ss:$16 sps:$4 sm:$0xff]  }
  0xf3   : > { %v3860_v24 = vadd.f32 %v3477_v6, %v364_v35  ;;  %v442_v37 = vadd.f32 %v4525_v39, %v357_v28  ;;  %v443_v3 = vadd.f32 %v3465_v2, %v358_v55  ;;  %v4528_v31 = vld [vmem:[#allocation35_spill] sm:$0xff]  ;;  %v444_v21 = vadd.f32 %v3474_v5, %v359_v12  ;;  %v4529_v0 = vld [vmem:[#allocation37_spill] sm:$0xff]  ;;  %v4530_v28 = vld [vmem:[#allocation34_spill] sm:$0xff]  ;;  %2358 = vmatpush1.bf16.msra.mxu1 %v2977_v51 }
  0xf4   : > { %v1080_v14 = vadd.f32 %v4528_v31, %v865_v38  ;;  %v1084_v45 = vadd.f32 %v1020_v17, %v869_v30  ;;  %v1082_v18 = vadd.f32 %v4529_v0, %v3803_v16  ;;  %v1086_v4 = vadd.f32 %v1022_v63, %v871_v10  ;;  %v2988_v15 = vld [vmem:[#allocation2 + $0x6c] ss:$16 sps:$4 sm:$0xff]   ;;  %2246 = vmatprep.subr.bf16.mxu0 %v2982_v7  ;;  %v2983_v26 = vld [vmem:[#allocation2 + $0x288] ss:$16 sps:$4 sm:$0xff]   ;;  %v4531_v16 = vld [vmem:[#allocation36_spill] sm:$0xff] }
  0xf5   : > { %v445_v35 = vadd.f32 %v3477_v6, %v360_v40  ;;  %v1079_v23 = vadd.f32 %v4530_v28, %v3794_v36  ;;  %v1083_v55 = vadd.f32 %v1019_v32, %v3813_v29  ;;  %v1081_v63 = vadd.f32 %v4531_v16, %v3801_v54  ;;  %2359 = vmatprep.subr.bf16.mxu1 %v2985_v13  ;;  %v725_v36 = vpop.permute.xlu0 %724  ;;  %v2992_v16 = vld [vmem:[#allocation2 + $0x48] ss:$16 sps:$4 sm:$0xff]  }
  0xf6   : > { %v1144_v20 = vmax.f32 %v1080_v14, 0.0  ;;  %v514_v38 = vpop.permute.xlu1 %513  ;;  %v1148_v12 = vmax.f32 %v1084_v45, 0.0  ;;  %v1146_v30 = vmax.f32 %v1082_v18, 0.0  ;;  %v1150_v17 = vmax.f32 %v1086_v4, 0.0  ;;  %2247 = vmatpush1.bf16.msra.mxu0 %v2980_v50  ;;  %v2986_v4 = vld [vmem:[#allocation2 + $0x68] ss:$16 sps:$4 sm:$0xff]  }
  0xf7   : > { %v1143_v8 = vmax.f32 %v1079_v23, 0.0  ;;  %v1147_v10 = vmax.f32 %v1083_v55, 0.0  ;;  %v1085_v40 = vadd.f32 %v1021_v27, %v3821_v1  ;;  %v593_v31 = vmul.f32 %v3404_v43, %v510_v22  ;;  %2248 = vmatprep.subr.bf16.mxu0 %v2988_v15  ;;  %2360 = vmatpush1.bf16.msra.mxu1 %v2983_v26  ;;  %v2991_v14 = vld [vmem:[#allocation2 + $0x26c] ss:$16 sps:$4 sm:$0xff]  }
  0xf8   : > { %v3876_v29 = vpack.c.bf16 %v1148_v12, %v1144_v20  ;;  %v3878_v32 = vpack.c.bf16 %v1150_v17, %v1146_v30  ;;  %v1145_v51 = vmax.f32 %v1081_v63, 0.0  ;;  %v594_v45 = vmul.f32 %v3407_v44, %v510_v22  ;;  %2361 = vmatprep.subr.bf16.mxu1 %v2991_v14 }
  0xf9   : > { %v3881_v18 = vpack.c.bf16 %v1147_v10, %v1143_v8  ;;  %v1149_v54 = vmax.f32 %v1085_v40, 0.0  ;;  %v595_v23 = vmul.f32 %v3413_v46, %v510_v22  ;;  %v596_v1 = vmul.f32 %v3416_v47, %v510_v22  ;;  %v2989_v22 = vld [vmem:[#allocation2 + $0x268] ss:$16 sps:$4 sm:$0xff]  }
  0xfa   : > { %4532 = vst [vmem:[#allocation27_spill] sm:$0xff] %v3876_v29  ;;  %4533 = vst [vmem:[#allocation39_spill] sm:$0xff] %v3878_v32  ;;  %2066 = vmatprep.mubr.bf16.mxu0 %v3876_v29  ;;  %2179 = vmatprep.mubr.bf16.mxu1 %v3878_v32  ;;  %v657_v20 = vadd.f32 %v593_v31, %v442_v37  ;;  %v658_v7 = vadd.f32 %v594_v45, %v443_v3  ;;  %v2994_v3 = vld [vmem:[#allocation2 + $0x4c] ss:$16 sps:$4 sm:$0xff]   ;;  %v3028_v29 = vld [vmem:[#allocation2 + $0x188] ss:$16 sps:$4 sm:$0xff]  }
  0xfb   : > { %4534 = vst [vmem:[#allocation29_spill] sm:$0xff] %v3881_v18  ;;  %v808_v27 = vmul.f32 %v3419_v48, %v725_v36  ;;  %v729_v13 = vpop.permute.xlu1 %728  ;;  %2067 = vmatmul.mubr.bf16.gmra.mxu0 %v3881_v18  ;;  %v3889_v15 = vpack.c.bf16 %v1149_v54, %v1145_v51  ;;  %v659_v50 = vadd.f32 %v595_v23, %v444_v21  ;;  %v2997_v31 = vld [vmem:[#allocation2 + $0x24c] ss:$16 sps:$4 sm:$0xff]  }
  0xfc   : > { %v660_v0 = vadd.f32 %v596_v1, %v445_v35  ;;  %v809_v28 = vmul.f32 %v3422_v49, %v725_v36  ;;  %v810_v55 = vmul.f32 %v3430_v52, %v725_v36  ;;  %v811_v26 = vmul.f32 %v3433_v53, %v725_v36  ;;  %2249 = vmatpush1.bf16.msra.mxu0 %v2986_v4 }
  0xfd   : > { %4535 = vst [vmem:[#allocation41_spill] sm:$0xff] %v3889_v15  ;;  %v872_v12 = vadd.f32 %v808_v27, %v657_v20  ;;  %v597_v37 = vmul.f32 %v3404_v43, %v514_v38  ;;  %2180 = vmatmul.mubr.bf16.gmra.mxu1 %v3889_v15  ;;  %v598_v17 = vmul.f32 %v3407_v44, %v514_v38  ;;  %v3003_v27 = vld [vmem:[#allocation2 + $0x22c] ss:$16 sps:$4 sm:$0xff]  }
  0xfe   : > { %v873_v30 = vadd.f32 %v809_v28, %v658_v7  ;;  %v599_v21 = vmul.f32 %v3413_v46, %v514_v38  ;;  %v600_v35 = vmul.f32 %v3416_v47, %v514_v38  ;;  %v874_v63 = vadd.f32 %v810_v55, %v659_v50  ;;  %2362 = vmatpush1.bf16.msra.mxu1 %v2989_v22  ;;  %v2995_v38 = vld [vmem:[#allocation2 + $0x248] ss:$16 sps:$4 sm:$0xff]   ;;  %v3000_v7 = vld [vmem:[#allocation2 + $0x2c] ss:$16 sps:$4 sm:$0xff]   ;;  %v4536_v55 = vld [vmem:[#allocation42_spill] sm:$0xff] }
  0xff   : > { %v875_v8 = vadd.f32 %v811_v26, %v660_v0  ;;  %v661_v10 = vadd.f32 %v597_v37, %v3842_v62  ;;  %v812_v40 = vmul.f32 %v3419_v48, %v729_v13  ;;  %v662_v36 = vadd.f32 %v598_v17, %v3850_v33  ;;  %2250 = vmatprep.subr.bf16.mxu0 %v2994_v3  ;;  %v2998_v50 = vld [vmem:[#allocation2 + $0x28] ss:$16 sps:$4 sm:$0xff]   ;;  %v3006_v26 = vld [vmem:[#allocation2 + $0xc] ss:$16 sps:$4 sm:$0xff]   ;;  %v4537_v3 = vld [vmem:[#allocation44_spill] sm:$0xff] }
 0x100   : > { %v663_v51 = vadd.f32 %v599_v21, %v3853_v25  ;;  %v664_v45 = vadd.f32 %v600_v35, %v3860_v24  ;;  %v813_v4 = vmul.f32 %v3422_v49, %v729_v13  ;;  %v940_v54 = vpop.permute.xlu1 %939  ;;  %v814_v23 = vmul.f32 %v3430_v52, %v729_v13  ;;  %2251 = vmatpush1.bf16.msra.mxu0 %v2992_v16  ;;  %v3001_v35 = vld [vmem:[#allocation2 + $0x228] ss:$16 sps:$4 sm:$0xff]   ;;  %v3009_v16 = vld [vmem:[#allocation2 + $0x20c] ss:$16 sps:$4 sm:$0xff]  }
 0x101   : > { %v815_v1 = vmul.f32 %v3433_v53, %v729_v13  ;;  %v876_v62 = vadd.f32 %v812_v40, %v661_v10  ;;  %v1023_v20 = vmul.f32 %v4526_v41, %v940_v54  ;;  %v1024_v25 = vmul.f32 %v4521_v56, %v940_v54  ;;  %2363 = vmatprep.subr.bf16.mxu1 %v2997_v31  ;;  %v4538_v40 = vld [vmem:[#allocation47_spill] sm:$0xff] }
 0x102   : > { %v877_v33 = vadd.f32 %v813_v4, %v662_v36  ;;  %v1025_v24 = vmul.f32 %v4527_v42, %v940_v54  ;;  %v1026_v14 = vmul.f32 %v4522_v19, %v940_v54  ;;  %v878_v0 = vadd.f32 %v814_v23, %v663_v51  ;;  %2364 = vmatpush1.bf16.msra.mxu1 %v2995_v38  ;;  %v3004_v31 = vld [vmem:[#allocation2 + $0x8] ss:$16 sps:$4 sm:$0xff]  }
 0x103   : > { %v879_v28 = vadd.f32 %v815_v1, %v664_v45  ;;  %v1087_v22 = vadd.f32 %v1023_v20, %v872_v12  ;;  %v1091_v13 = vadd.f32 %v4536_v55, %v876_v62  ;;  %v1088_v37 = vadd.f32 %v1024_v25, %v873_v30  ;;  %2252 = vmatprep.subr.bf16.mxu0 %v3000_v7  ;;  %v4539_v12 = vld [vmem:[#allocation45_spill] sm:$0xff] }
 0x104   : > { %v1092_v17 = vadd.f32 %v4537_v3, %v877_v33  ;;  %v1090_v21 = vadd.f32 %v1026_v14, %v875_v8  ;;  %v1089_v54 = vadd.f32 %v1025_v24, %v874_v63  ;;  %2365 = vmatprep.subr.bf16.mxu1 %v3003_v27  ;;  %v1093_v45 = vadd.f32 %v4539_v12, %v878_v0  ;;  %v3007_v27 = vld [vmem:[#allocation2 + $0x208] ss:$16 sps:$4 sm:$0xff]   ;;  %v3012_v33 = vld [vmem:[#allocation2 + $0x1ec] ss:$16 sps:$4 sm:$0xff]  }
 0x105   : > { %v275_v10 = vpop.permute.xlu1 %274  ;;  %v1094_v36 = vadd.f32 %v4538_v40, %v879_v28  ;;  %v1151_v4 = vmax.f32 %v1087_v22, 0.0  ;;  %v1155_v51 = vmax.f32 %v1091_v13, 0.0  ;;  %2253 = vmatpush1.bf16.msra.mxu0 %v2998_v50  ;;  %v1152_v23 = vmax.f32 %v1088_v37, 0.0  ;;  %v3010_v24 = vld [vmem:[#allocation2 + $0x1e8] ss:$16 sps:$4 sm:$0xff]  }
 0x106   : > { %v1156_v30 = vmax.f32 %v1092_v17, 0.0  ;;  %v1154_v1 = vmax.f32 %v1090_v21, 0.0  ;;  %2254 = vmatprep.subr.bf16.mxu0 %v3006_v26  ;;  %2366 = vmatpush1.bf16.msra.mxu1 %v3001_v35  ;;  %v1153_v7 = vmax.f32 %v1089_v54, 0.0  ;;  %v1157_v25 = vmax.f32 %v1093_v45, 0.0  ;;  %v3015_v0 = vld [vmem:[#allocation2 + $0x3ec] ss:$16 sps:$4 sm:$0xff]   ;;  %v737_v17 = vpop.permute.xlu0 %736 }
 0x107   : > { %v1158_v62 = vmax.f32 %v1094_v36, 0.0  ;;  %v3919_v63 = vpack.c.bf16 %v1155_v51, %v1151_v4  ;;  %2367 = vmatprep.subr.bf16.mxu1 %v3009_v16  ;;  %v365_v14 = vmul.f32 %v3450_v58, %v275_v10  ;;  %v366_v28 = vmul.f32 %v3453_v59, %v275_v10  ;;  %v3013_v26 = vld [vmem:[#allocation2 + $0x3e8] ss:$16 sps:$4 sm:$0xff]   ;;  %v3018_v21 = vld [vmem:[#allocation2 + $0x1cc] ss:$16 sps:$4 sm:$0xff]  }
 0x108   : > { %v3915_v8 = vpack.c.bf16 %v1156_v30, %v1152_v23  ;;  %v3925_v50 = vpack.c.bf16 %v1157_v25, %v1153_v7  ;;  %v367_v22 = vmul.f32 %v3456_v61, %v275_v10  ;;  %v368_v55 = vmul.f32 %v4520_v60, %v275_v10  ;;  %v4544_v37 = vld [vmem:[#allocation43_spill] sm:$0xff] }
 0x109   : > { %v3917_v38 = vpack.c.bf16 %v1158_v62, %v1154_v1  ;;  %v280_v20 = vpop.permute.xlu1 %279  ;;  %4542 = vst [vmem:[#allocation26_spill] sm:$0xff] %v3919_v63  ;;  %2255 = vmatpush1.bf16.msra.mxu0 %v3004_v31  ;;  %v601_v3 = vmul.f32 %v3404_v43, %v4544_v37  ;;  %v602_v35 = vmul.f32 %v3407_v44, %v4544_v37  ;;  %v3016_v4 = vld [vmem:[#allocation2 + $0x1c8] ss:$16 sps:$4 sm:$0xff]   ;;  %v3021_v45 = vld [vmem:[#allocation2 + $0x3cc] ss:$16 sps:$4 sm:$0xff]  }
 0x10a   : > { %4540 = vst [vmem:[#allocation31_spill] sm:$0xff] %v3915_v8  ;;  %2076 = vmatprep.mubr.bf16.mxu0 %v3915_v8  ;;  %4543 = vst [vmem:[#allocation38_spill] sm:$0xff] %v3925_v50  ;;  %2368 = vmatpush1.bf16.msra.mxu1 %v3007_v27  ;;  %v603_v40 = vmul.f32 %v3413_v46, %v4544_v37  ;;  %v369_v36 = vmul.f32 %v3450_v58, %v280_v20  ;;  %v3019_v62 = vld [vmem:[#allocation2 + $0x3c8] ss:$16 sps:$4 sm:$0xff]  }
 0x10b   : > { %4541 = vst [vmem:[#allocation33_spill] sm:$0xff] %v3917_v38  ;;  %2189 = vmatprep.mubr.bf16.mxu1 %v3917_v38  ;;  %2077 = vmatmul.mubr.bf16.gmra.mxu0 %v3919_v63  ;;  %v370_v10 = vmul.f32 %v3453_v59, %v280_v20  ;;  %v604_v54 = vmul.f32 %v3416_v47, %v4544_v37 }
 0x10c   : > { %2256 = vmatprep.subr.bf16.mxu0 %v3012_v33  ;;  %2190 = vmatmul.mubr.bf16.gmra.mxu1 %v3925_v50  ;;  %v450_v16 = vadd.f32 %v4525_v39, %v365_v14  ;;  %v371_v51 = vmul.f32 %v3456_v61, %v280_v20  ;;  %v372_v12 = vmul.f32 %v4520_v60, %v280_v20 }
 0x10d   : > { %2257 = vmatpush2.bf16.msra.mxu0 %v3010_v24  ;;  %2369 = vmatprep.subr.bf16.mxu1 %v3015_v0  ;;  %v451_v31 = vadd.f32 %v3465_v2, %v366_v28  ;;  %v452_v23 = vadd.f32 %v3474_v5, %v367_v22  ;;  %v453_v30 = vadd.f32 %v3477_v6, %v368_v55  ;;  %v3024_v24 = vld [vmem:[#allocation2 + $0x1ac] ss:$16 sps:$4 sm:$0xff]   ;;  %v3022_v55 = vld [vmem:[#allocation2 + $0x1a8] ss:$16 sps:$4 sm:$0xff]  }
 0x10e   : > { %v522_v13 = vpop.permute.xlu1 %521  ;;  %v820_v1 = vmul.f32 %v3419_v48, %v737_v17  ;;  %2370 = vmatpush2.bf16.msra.mxu1 %v3013_v26  ;;  %2258 = vmatprep.subr.bf16.mxu0 %v3018_v21  ;;  %v454_v14 = vadd.f32 %v4525_v39, %v369_v36  ;;  %v455_v0 = vadd.f32 %v3465_v2, %v370_v10  ;;  %v3027_v26 = vld [vmem:[#allocation2 + $0x3ac] ss:$16 sps:$4 sm:$0xff]  }
 0x10f   : > { %v605_v7 = vmul.f32 %v3404_v43, %v522_v13  ;;  %v606_v27 = vmul.f32 %v3407_v44, %v522_v13  ;;  %v607_v33 = vmul.f32 %v3413_v46, %v522_v13  ;;  %v608_v20 = vmul.f32 %v3416_v47, %v522_v13  ;;  %2371 = vmatprep.subr.bf16.mxu1 %v3021_v45  ;;  %v3030_v21 = vld [vmem:[#allocation2 + $0x18c] ss:$16 sps:$4 sm:$0xff]  }
 0x110   : > { %v821_v28 = vmul.f32 %v3422_v49, %v737_v17  ;;  %v822_v22 = vmul.f32 %v3430_v52, %v737_v17  ;;  %v456_v37 = vadd.f32 %v3474_v5, %v371_v51  ;;  %v457_v50 = vadd.f32 %v3477_v6, %v372_v12  ;;  %v3033_v12 = vld [vmem:[#allocation2 + $0x38c] ss:$16 sps:$4 sm:$0xff]  }
 0x111   : > { %2259 = vmatpush2.bf16.msra.mxu0 %v3016_v4  ;;  %v823_v13 = vmul.f32 %v3433_v53, %v737_v17  ;;  %v665_v63 = vadd.f32 %v601_v3, %v450_v16  ;;  %v3025_v4 = vld [vmem:[#allocation2 + $0x3a8] ss:$16 sps:$4 sm:$0xff]   ;;  %v669_v15 = vadd.f32 %v605_v7, %v454_v14  ;;  %v670_v18 = vadd.f32 %v606_v27, %v455_v0  ;;  %v3036_v27 = vld [vmem:[#allocation2 + $0x16c] ss:$16 sps:$4 sm:$0xff]  }
 0x112   : > { %2372 = vmatpush2.bf16.msra.mxu1 %v3019_v62  ;;  %v671_v51 = vadd.f32 %v607_v33, %v456_v37  ;;  %v672_v32 = vadd.f32 %v608_v20, %v457_v50  ;;  %2260 = vmatprep.subr.bf16.mxu0 %v3024_v24  ;;  %v666_v17 = vadd.f32 %v602_v35, %v451_v31  ;;  %v3034_v37 = vld [vmem:[#allocation2 + $0x168] ss:$16 sps:$4 sm:$0xff]  }
 0x113   : > { %v733_v25 = vpop.permute.xlu1 %732  ;;  %v667_v3 = vadd.f32 %v603_v40, %v452_v23  ;;  %v668_v16 = vadd.f32 %v604_v54, %v453_v30  ;;  %2373 = vmatprep.subr.bf16.mxu1 %v3027_v26  ;;  %v3031_v40 = vld [vmem:[#allocation2 + $0x388] ss:$16 sps:$4 sm:$0xff]   ;;  %v884_v54 = vadd.f32 %v820_v1, %v669_v15  ;;  %v885_v31 = vadd.f32 %v821_v28, %v670_v18  ;;  %v3042_v18 = vld [vmem:[#allocation2 + $0x14c] ss:$16 sps:$4 sm:$0xff]  }
 0x114   : > { %v816_v36 = vmul.f32 %v3419_v48, %v733_v25  ;;  %v817_v10 = vmul.f32 %v3422_v49, %v733_v25  ;;  %v818_v38 = vmul.f32 %v3430_v52, %v733_v25  ;;  %v819_v8 = vmul.f32 %v3433_v53, %v733_v25  ;;  %v3039_v25 = vld [vmem:[#allocation2 + $0x36c] ss:$16 sps:$4 sm:$0xff]  }
 0x115   : > { %2261 = vmatpush2.bf16.msra.mxu0 %v3022_v55  ;;  %v886_v23 = vadd.f32 %v822_v22, %v671_v51  ;;  %v887_v30 = vadd.f32 %v823_v13, %v672_v32  ;;  %v3037_v32 = vld [vmem:[#allocation2 + $0x368] ss:$16 sps:$4 sm:$0xff]  }
 0x116   : > { %2262 = vmatprep.subr.bf16.mxu0 %v3030_v21  ;;  %v880_v50 = vadd.f32 %v816_v36, %v665_v63  ;;  %v881_v33 = vadd.f32 %v817_v10, %v666_v17  ;;  %v882_v20 = vadd.f32 %v818_v38, %v667_v3  ;;  %v883_v35 = vadd.f32 %v819_v8, %v668_v16  ;;  %v3040_v10 = vld [vmem:[#allocation2 + $0x148] ss:$16 sps:$4 sm:$0xff]  }
 0x117   : > { %2374 = vmatpush2.bf16.msra.mxu1 %v3025_v4  ;;  %v373_v16 = vmul.f32 %v3450_v58, %v3815_v9 }
 0x118   : > { %v948_v45 = vpop.permute.xlu1 %947  ;;  %2375 = vmatprep.subr.bf16.mxu1 %v3033_v12 }
 0x119   : > { %v1031_v57 = vmul.f32 %v4526_v41, %v948_v45  ;;  %v1032_v34 = vmul.f32 %v4521_v56, %v948_v45  ;;  %v1033_v62 = vmul.f32 %v4527_v42, %v948_v45  ;;  %v1034_v7 = vmul.f32 %v4522_v19, %v948_v45  ;;  %2263 = vmatpush2.bf16.msra.mxu0 %v3028_v29  ;;  %v3973_v45 = vpop.permute.xlu0 %748 }
 0x11a   : > { %2264 = vmatprep.subr.bf16.mxu0 %v3036_v27 }
 0x11b   : > { %v1096_v14 = vadd.f32 %v1032_v34, %v881_v33  ;;  %v1098_v0 = vadd.f32 %v1034_v7, %v883_v35  ;;  %v1095_v55 = vadd.f32 %v1031_v57, %v880_v50  ;;  %v1097_v26 = vadd.f32 %v1033_v62, %v882_v20  ;;  %2376 = vmatpush2.bf16.msra.mxu1 %v3031_v40  ;;  %v3045_v57 = vld [vmem:[#allocation2 + $0x34c] ss:$16 sps:$4 sm:$0xff]   ;;  %v3043_v33 = vld [vmem:[#allocation2 + $0x348] ss:$16 sps:$4 sm:$0xff]  }
 0x11c   : > { %v952_v24 = vpop.permute.xlu1 %951  ;;  %2377 = vmatprep.subr.bf16.mxu1 %v3039_v25  ;;  %v374_v20 = vmul.f32 %v3453_v59, %v3815_v9  ;;  %v375_v35 = vmul.f32 %v3456_v61, %v3815_v9  ;;  %v376_v40 = vmul.f32 %v4520_v60, %v3815_v9 }
 0x11d   : > { %v1035_v63 = vmul.f32 %v4526_v41, %v952_v24  ;;  %v1036_v38 = vmul.f32 %v4521_v56, %v952_v24  ;;  %v1037_v8 = vmul.f32 %v4527_v42, %v952_v24  ;;  %v1038_v15 = vmul.f32 %v4522_v19, %v952_v24  ;;  %2265 = vmatpush2.bf16.msra.mxu0 %v3034_v37  ;;  %v3049_v37 = vld [vmem:[#allocation2 + $0x328] ss:$16 sps:$4 sm:$0xff]  }
 0x11e   : > { %v1160_v29 = vmax.f32 %v1096_v14, 0.0  ;;  %v1162_v13 = vmax.f32 %v1098_v0, 0.0  ;;  %v1159_v21 = vmax.f32 %v1095_v55, 0.0  ;;  %v1161_v36 = vmax.f32 %v1097_v26, 0.0  ;;  %2266 = vmatprep.subr.bf16.mxu0 %v3042_v18  ;;  %v3054_v14 = vld [vmem:[#allocation2 + $0x10c] ss:$16 sps:$4 sm:$0xff]  }
 0x11f   : > { %v1100_v1 = vadd.f32 %v1036_v38, %v885_v31  ;;  %v1102_v28 = vadd.f32 %v1038_v15, %v887_v30  ;;  %v1099_v34 = vadd.f32 %v1035_v63, %v884_v54  ;;  %v1101_v22 = vadd.f32 %v1037_v8, %v886_v23  ;;  %2378 = vmatpush2.bf16.msra.mxu1 %v3037_v32  ;;  %v3048_v54 = vld [vmem:[#allocation2 + $0x12c] ss:$16 sps:$4 sm:$0xff]   ;;  %v3046_v23 = vld [vmem:[#allocation2 + $0x128] ss:$16 sps:$4 sm:$0xff]   ;;  %v4548_v30 = vld [vmem:[#allocation46_spill] sm:$0xff]  ;;  %v956_v15 = vpop.permute.xlu0 %955 }
 0x120   : > { %2379 = vmatprep.subr.bf16.mxu1 %v3045_v57  ;;  %v3051_v31 = vld [vmem:[#allocation2 + $0x32c] ss:$16 sps:$4 sm:$0xff]   ;;  %v613_v25 = vmul.f32 %v3404_v43, %v4548_v30  ;;  %v614_v9 = vmul.f32 %v3407_v44, %v4548_v30  ;;  %v615_v0 = vmul.f32 %v3413_v46, %v4548_v30  ;;  %v616_v55 = vmul.f32 %v3416_v47, %v4548_v30 }
 0x121   : > { %v290_v4 = vpop.permute.xlu1 %289  ;;  %v1164_v51 = vmax.f32 %v1100_v1, 0.0  ;;  %v1166_v12 = vmax.f32 %v1102_v28, 0.0  ;;  %v1163_v17 = vmax.f32 %v1099_v34, 0.0  ;;  %v1165_v3 = vmax.f32 %v1101_v22, 0.0  ;;  %2267 = vmatpush2.bf16.msra.mxu0 %v3040_v10  ;;  %v3057_v18 = vld [vmem:[#allocation2 + $0x30c] ss:$16 sps:$4 sm:$0xff]  }
 0x122   : > { %v458_v26 = vadd.f32 %v4525_v39, %v373_v16  ;;  %v459_v63 = vadd.f32 %v3465_v2, %v374_v20  ;;  %v460_v38 = vadd.f32 %v3474_v5, %v375_v35  ;;  %v461_v8 = vadd.f32 %v3477_v6, %v376_v40  ;;  %2268 = vmatprep.subr.bf16.mxu0 %v3048_v54  ;;  %v3052_v22 = vld [vmem:[#allocation2 + $0x108] ss:$16 sps:$4 sm:$0xff]  }
 0x123   : > { %v3975_v62 = vpack.c.bf16 %v1164_v51, %v1160_v29  ;;  %v3977_v7 = vpack.c.bf16 %v1166_v12, %v1162_v13  ;;  %v3979_v27 = vpack.c.bf16 %v1163_v17, %v1159_v21  ;;  %v3981_v50 = vpack.c.bf16 %v1165_v3, %v1161_v36  ;;  %2380 = vmatpush2.bf16.msra.mxu1 %v3043_v33  ;;  %v3055_v3 = vld [vmem:[#allocation2 + $0x308] ss:$16 sps:$4 sm:$0xff]  }
 0x124   : > { %2381 = vmatprep.subr.bf16.mxu1 %v3051_v31  ;;  %v377_v57 = vmul.f32 %v3450_v58, %v290_v4  ;;  %v378_v29 = vmul.f32 %v3453_v59, %v290_v4  ;;  %v379_v13 = vmul.f32 %v3456_v61, %v290_v4  ;;  %v380_v21 = vmul.f32 %v4520_v60, %v290_v4 }
 0x125   : > { %4545 = vst [vmem:[#allocation28_spill] sm:$0xff] %v3977_v7  ;;  %4546 = vst [vmem:[#allocation30_spill] sm:$0xff] %v3979_v27  ;;  %2086 = vmatprep.mubr.bf16.mxu0 %v3975_v62  ;;  %2199 = vmatprep.mubr.bf16.mxu1 %v3977_v7  ;;  %v1039_v10 = vmul.f32 %v4526_v41, %v956_v15  ;;  %v1040_v51 = vmul.f32 %v4521_v56, %v956_v15 }
 0x126   : > { %4547 = vst [vmem:[#allocation40_spill] sm:$0xff] %v3981_v50  ;;  %2087 = vmatmul.mubr.bf16.gmra.mxu0 %v3979_v27  ;;  %2200 = vmatmul.mubr.bf16.gmra.mxu1 %v3981_v50  ;;  %v526_v24 = vpop.permute.xlu1 %525  ;;  %v1041_v12 = vmul.f32 %v4527_v42, %v956_v15  ;;  %v1042_v17 = vmul.f32 %v4522_v19, %v956_v15 }
 0x127   : > { %v609_v32 = vmul.f32 %v3404_v43, %v526_v24  ;;  %v610_v1 = vmul.f32 %v3407_v44, %v526_v24  ;;  %v611_v28 = vmul.f32 %v3413_v46, %v526_v24  ;;  %v612_v34 = vmul.f32 %v3416_v47, %v526_v24  ;;  %2269 = vmatpush2.bf16.msra.mxu0 %v3046_v23 }
 0x128   : > { %2270 = vmatprep.subr.bf16.mxu0 %v3054_v14  ;;  %2382 = vmatpush2.bf16.msra.mxu1 %v3049_v37  ;;  %v462_v23 = vadd.f32 %v4525_v39, %v377_v57  ;;  %v463_v30 = vadd.f32 %v3465_v2, %v378_v29  ;;  %v464_v24 = vadd.f32 %v3474_v5, %v379_v13 }
 0x129   : > { %2383 = vmatprep.subr.bf16.mxu1 %v3057_v18  ;;  %v673_v35 = vadd.f32 %v609_v32, %v458_v26  ;;  %v674_v40 = vadd.f32 %v610_v1, %v459_v63  ;;  %v675_v54 = vadd.f32 %v611_v28, %v460_v38  ;;  %v676_v31 = vadd.f32 %v612_v34, %v461_v8 }
 0x12a   : > { %v465_v14 = vadd.f32 %v3477_v6, %v380_v21  ;;  %v677_v18 = vadd.f32 %v613_v25, %v462_v23  ;;  %v678_v32 = vadd.f32 %v614_v9, %v463_v30  ;;  %v679_v1 = vadd.f32 %v615_v0, %v464_v24 }
 0x12b   : > { %v741_v36 = vpop.permute.xlu1 %740  ;;  %2271 = vmatpush2.bf16.msra.mxu0 %v3052_v22  ;;  %v386_v23 = vmul.f32 %v3453_v59, %v3847_v11  ;;  %v387_v30 = vmul.f32 %v3456_v61, %v3847_v11  ;;  %v388_v24 = vmul.f32 %v4520_v60, %v3847_v11 }
 0x12c   : > { %v824_v16 = vmul.f32 %v3419_v48, %v741_v36  ;;  %v825_v33 = vmul.f32 %v3422_v49, %v741_v36  ;;  %v826_v20 = vmul.f32 %v3430_v52, %v741_v36  ;;  %v827_v4 = vmul.f32 %v3433_v53, %v741_v36  ;;  %2384 = vmatpush2.bf16.msra.mxu1 %v3055_v3 }
 0x12d   : > { %v680_v28 = vadd.f32 %v616_v55, %v465_v14 }
 0x12e   : > { %v888_v37 = vadd.f32 %v824_v16, %v673_v35  ;;  %v889_v15 = vadd.f32 %v825_v33, %v674_v40  ;;  %v890_v50 = vadd.f32 %v826_v20, %v675_v54  ;;  %v891_v27 = vadd.f32 %v827_v4, %v676_v31 }
 0x12f   : > { %v745_v7 = vpop.permute.xlu1 %744  ;;  %v385_v31 = vmul.f32 %v3450_v58, %v3847_v11  ;;  %v471_v11 = vadd.f32 %v3465_v2, %v386_v23 }
 0x130   : > { %v828_v26 = vmul.f32 %v3419_v48, %v745_v7  ;;  %v829_v63 = vmul.f32 %v3422_v49, %v745_v7  ;;  %v830_v38 = vmul.f32 %v3430_v52, %v745_v7  ;;  %v831_v8 = vmul.f32 %v3433_v53, %v745_v7 }
 0x131   : > { %v1104_v34 = vadd.f32 %v1040_v51, %v889_v15  ;;  %v1106_v22 = vadd.f32 %v1042_v17, %v891_v27  ;;  %v1103_v57 = vadd.f32 %v1039_v10, %v888_v37  ;;  %v1105_v29 = vadd.f32 %v1041_v12, %v890_v50 }
 0x132   : > { %v892_v13 = vadd.f32 %v828_v26, %v677_v18  ;;  %v893_v21 = vadd.f32 %v829_v63, %v678_v32  ;;  %v894_v36 = vadd.f32 %v830_v38, %v679_v1  ;;  %v895_v3 = vadd.f32 %v831_v8, %v680_v28 }
 0x133   : > { %v1168_v27 = vmax.f32 %v1104_v34, 0.0  ;;  %v1170_v10 = vmax.f32 %v1106_v22, 0.0  ;;  %v1167_v50 = vmax.f32 %v1103_v57, 0.0  ;;  %v1169_v51 = vmax.f32 %v1105_v29, 0.0 }
 0x134   : > { %v960_v16 = vpop.permute.xlu1 %959  ;;  %v470_v38 = vadd.f32 %v4525_v39, %v385_v31  ;;  %v472_v8 = vadd.f32 %v3474_v5, %v387_v30  ;;  %v473_v18 = vadd.f32 %v3477_v6, %v388_v24  ;;  %v832_v22 = vmul.f32 %v3419_v48, %v3973_v45 }
 0x135   : > { %v1043_v33 = vmul.f32 %v4526_v41, %v960_v16  ;;  %v1044_v20 = vmul.f32 %v4521_v56, %v960_v16  ;;  %v1045_v4 = vmul.f32 %v4527_v42, %v960_v16  ;;  %v1046_v7 = vmul.f32 %v4522_v19, %v960_v16 }
 0x136   : > { %v833_v57 = vmul.f32 %v3422_v49, %v3973_v45  ;;  %v834_v29 = vmul.f32 %v3430_v52, %v3973_v45 }
 0x137   : > { %v1108_v25 = vadd.f32 %v1044_v20, %v893_v21  ;;  %v1110_v9 = vadd.f32 %v1046_v7, %v895_v3  ;;  %v1107_v0 = vadd.f32 %v1043_v33, %v892_v13  ;;  %v1109_v55 = vadd.f32 %v1045_v4, %v894_v36  ;;  %v968_v20 = vpop.permute.xlu0 %967 }
 0x138   : > { %v835_v13 = vmul.f32 %v3433_v53, %v3973_v45 }
 0x139   : > { %v295_v12 = vpop.permute.xlu1 %294  ;;  %v1172_v17 = vmax.f32 %v1108_v25, 0.0  ;;  %v1174_v35 = vmax.f32 %v1110_v9, 0.0  ;;  %v1171_v40 = vmax.f32 %v1107_v0, 0.0  ;;  %v1173_v54 = vmax.f32 %v1109_v55, 0.0 }
 0x13a   : > { %v381_v32 = vmul.f32 %v3450_v58, %v295_v12  ;;  %v382_v1 = vmul.f32 %v3453_v59, %v295_v12  ;;  %v383_v28 = vmul.f32 %v3456_v61, %v295_v12  ;;  %v384_v34 = vmul.f32 %v4520_v60, %v295_v12 }
 0x13b   : > { %v4041_v14 = vpack.c.bf16 %v1172_v17, %v1168_v27  ;;  %v4043_v37 = vpack.c.bf16 %v1174_v35, %v1170_v10  ;;  %v4045_v15 = vpack.c.bf16 %v1171_v40, %v1167_v50  ;;  %v4047_v26 = vpack.c.bf16 %v1173_v54, %v1169_v51 }
 0x13c   : > { %v466_v45 = vadd.f32 %v4525_v39, %v381_v32  ;;  %v467_v0 = vadd.f32 %v3465_v2, %v382_v1  ;;  %v468_v55 = vadd.f32 %v3474_v5, %v383_v28  ;;  %v469_v27 = vadd.f32 %v3477_v6, %v384_v34 }
 0x13d   : > { %4549 = vst [vmem:[#allocation32_spill] sm:$0xff] %v4047_v26  ;;  %2096 = vmatprep.mubr.bf16.mxu0 %v4041_v14  ;;  %2209 = vmatprep.mubr.bf16.mxu1 %v4043_v37  ;;  %v1051_v10 = vmul.f32 %v4526_v41, %v968_v20  ;;  %v1052_v50 = vmul.f32 %v4521_v56, %v968_v20 }
 0x13e   : > { %2097 = vmatmul.mubr.bf16.gmra.mxu0 %v4045_v15  ;;  %2210 = vmatmul.mubr.bf16.gmra.mxu1 %v4047_v26  ;;  %v534_v63 = vpop.permute.xlu1 %533  ;;  %v1053_v51 = vmul.f32 %v4527_v42, %v968_v20  ;;  %v1054_v12 = vmul.f32 %v4522_v19, %v968_v20 }
 0x13f   : > { %v617_v21 = vmul.f32 %v3404_v43, %v534_v63  ;;  %v618_v36 = vmul.f32 %v3407_v44, %v534_v63  ;;  %v619_v3 = vmul.f32 %v3413_v46, %v534_v63  ;;  %v620_v16 = vmul.f32 %v3416_v47, %v534_v63 }
 0x141   : > { %v681_v17 = vadd.f32 %v617_v21, %v466_v45  ;;  %v682_v35 = vadd.f32 %v618_v36, %v467_v0  ;;  %v683_v40 = vadd.f32 %v619_v3, %v468_v55  ;;  %v684_v54 = vadd.f32 %v620_v16, %v469_v27 }
 0x142   : > { %v538_v33 = vpop.permute.xlu1 %537 }
 0x143   : > { %v621_v4 = vmul.f32 %v3404_v43, %v538_v33  ;;  %v622_v7 = vmul.f32 %v3407_v44, %v538_v33  ;;  %v623_v25 = vmul.f32 %v3413_v46, %v538_v33  ;;  %v624_v9 = vmul.f32 %v3416_v47, %v538_v33 }
 0x144   : > { %v897_v36 = vadd.f32 %v833_v57, %v682_v35  ;;  %v899_v3 = vadd.f32 %v835_v13, %v684_v54  ;;  %v896_v16 = vadd.f32 %v832_v22, %v681_v17 }
 0x145   : > { %v685_v31 = vadd.f32 %v621_v4, %v470_v38  ;;  %v686_v23 = vadd.f32 %v622_v7, %v471_v11  ;;  %v687_v30 = vadd.f32 %v623_v25, %v472_v8  ;;  %v688_v24 = vadd.f32 %v624_v9, %v473_v18 }
 0x146   : > { %v898_v38 = vadd.f32 %v834_v29, %v683_v40 }
 0x147   : > { %v753_v63 = vpop.permute.xlu1 %752 }
 0x148   : > { %v836_v32 = vmul.f32 %v3419_v48, %v753_v63  ;;  %v837_v1 = vmul.f32 %v3422_v49, %v753_v63  ;;  %v838_v28 = vmul.f32 %v3430_v52, %v753_v63  ;;  %v839_v34 = vmul.f32 %v3433_v53, %v753_v63 }
 0x14a   : > { %v900_v33 = vadd.f32 %v836_v32, %v685_v31  ;;  %v901_v26 = vadd.f32 %v837_v1, %v686_v23  ;;  %v902_v20 = vadd.f32 %v838_v28, %v687_v30  ;;  %v903_v21 = vadd.f32 %v839_v34, %v688_v24  ;;  %v542_v24 = vpop.permute.xlu0 %541 }
 0x14b   : > { %v625_v32 = vmul.f32 %v3404_v43, %v542_v24  ;;  %v626_v1 = vmul.f32 %v3407_v44, %v542_v24  ;;  %v627_v28 = vmul.f32 %v3413_v46, %v542_v24  ;;  %v628_v34 = vmul.f32 %v3416_v47, %v542_v24 }
 0x14c   : > { %v964_v11 = vpop.permute.xlu1 %963  ;;  %v1116_v8 = vadd.f32 %v1052_v50, %v901_v26  ;;  %v1118_v18 = vadd.f32 %v1054_v12, %v903_v21  ;;  %v1115_v4 = vadd.f32 %v1051_v10, %v900_v33  ;;  %v1117_v7 = vadd.f32 %v1053_v51, %v902_v20 }
 0x14d   : > { %v1047_v25 = vmul.f32 %v4526_v41, %v964_v11  ;;  %v1048_v9 = vmul.f32 %v4521_v56, %v964_v11  ;;  %v1049_v45 = vmul.f32 %v4527_v42, %v964_v11  ;;  %v1050_v0 = vmul.f32 %v4522_v19, %v964_v11 }
 0x14e   : > { %v1180_v13 = vmax.f32 %v1116_v8, 0.0  ;;  %v1182_v22 = vmax.f32 %v1118_v18, 0.0  ;;  %v1179_v29 = vmax.f32 %v1115_v4, 0.0  ;;  %v1181_v17 = vmax.f32 %v1117_v7, 0.0  ;;  %v761_v33 = vpop.permute.xlu0 %760 }
 0x14f   : > { %v1112_v55 = vadd.f32 %v1048_v9, %v897_v36  ;;  %v1114_v27 = vadd.f32 %v1050_v0, %v899_v3  ;;  %v1111_v31 = vadd.f32 %v1047_v25, %v896_v16  ;;  %v1113_v57 = vadd.f32 %v1049_v45, %v898_v38 }
 0x150   : > { %v844_v18 = vmul.f32 %v3419_v48, %v761_v33  ;;  %v845_v4 = vmul.f32 %v3422_v49, %v761_v33  ;;  %v846_v7 = vmul.f32 %v3430_v52, %v761_v33  ;;  %v847_v25 = vmul.f32 %v3433_v53, %v761_v33 }
 0x151   : > { %v305_v26 = vpop.permute.xlu1 %304  ;;  %v1176_v50 = vmax.f32 %v1112_v55, 0.0  ;;  %v1178_v10 = vmax.f32 %v1114_v27, 0.0  ;;  %v1175_v51 = vmax.f32 %v1111_v31, 0.0  ;;  %v1177_v12 = vmax.f32 %v1113_v57, 0.0 }
 0x152   : > { %v389_v20 = vmul.f32 %v3450_v58, %v305_v26  ;;  %v390_v21 = vmul.f32 %v3453_v59, %v305_v26  ;;  %v391_v36 = vmul.f32 %v3456_v61, %v305_v26  ;;  %v392_v3 = vmul.f32 %v4520_v60, %v305_v26 }
 0x153   : > { %v4093_v35 = vpack.c.bf16 %v1180_v13, %v1176_v50  ;;  %v4095_v40 = vpack.c.bf16 %v1182_v22, %v1178_v10  ;;  %v4097_v54 = vpack.c.bf16 %v1179_v29, %v1175_v51  ;;  %v4099_v23 = vpack.c.bf16 %v1181_v17, %v1177_v12 }
 0x154   : > { %v476_v55 = vadd.f32 %v3474_v5, %v391_v36  ;;  %v477_v27 = vadd.f32 %v3477_v6, %v392_v3 }
 0x155   : > { %2106 = vmatprep.mubr.bf16.mxu0 %v4093_v35  ;;  %2219 = vmatprep.mubr.bf16.mxu1 %v4095_v40  ;;  %v310_v30 = vpop.permute.xlu1 %309 }
 0x156   : > { %2107 = vmatmul.mubr.bf16.gmra.mxu0 %v4097_v54  ;;  %2220 = vmatmul.mubr.bf16.gmra.mxu1 %v4099_v23  ;;  %v393_v16 = vmul.f32 %v3450_v58, %v310_v30  ;;  %v394_v38 = vmul.f32 %v3453_v59, %v310_v30  ;;  %v395_v11 = vmul.f32 %v3456_v61, %v310_v30 }
 0x157   : > { %v396_v8 = vmul.f32 %v4520_v60, %v310_v30  ;;  %v474_v61 = vadd.f32 %v4525_v39, %v389_v20  ;;  %v475_v60 = vadd.f32 %v3465_v2, %v390_v21  ;;  %v691_v51 = vadd.f32 %v627_v28, %v476_v55 }
 0x158   : > { %v478_v31 = vadd.f32 %v4525_v39, %v393_v16  ;;  %v479_v57 = vadd.f32 %v3465_v2, %v394_v38  ;;  %v692_v2 = vadd.f32 %v628_v34, %v477_v27 }
 0x159   : > { %v689_v10 = vadd.f32 %v625_v32, %v474_v61  ;;  %v690_v39 = vadd.f32 %v626_v1, %v475_v60 }
 0x15a   : > { %v546_v63 = vpop.permute.xlu1 %545 }
 0x15b   : > { %v629_v45 = vmul.f32 %v3404_v43, %v546_v63  ;;  %v630_v0 = vmul.f32 %v3407_v44, %v546_v63  ;;  %v631_v58 = vmul.f32 %v3413_v46, %v546_v63  ;;  %v632_v59 = vmul.f32 %v3416_v47, %v546_v63 }
 0x15c   : > { %v480_v43 = vadd.f32 %v3474_v5, %v395_v11  ;;  %v481_v44 = vadd.f32 %v3477_v6, %v396_v8 }
 0x15d   : > { %v693_v29 = vadd.f32 %v629_v45, %v478_v31  ;;  %v694_v17 = vadd.f32 %v630_v0, %v479_v57  ;;  %v4552_v31 = vld [vmem:[#allocation22_spill] sm:$0xff]  ;;  %v4553_v57 = vld [vmem:[#allocation8_spill] sm:$0xff] }
 0x15e   : > { %v695_v26 = vadd.f32 %v631_v58, %v480_v43  ;;  %v696_v50 = vadd.f32 %v632_v59, %v481_v44  ;;  %v4554_v43 = vld [vmem:[#allocation23_spill] sm:$0xff]  ;;  %v4555_v44 = vld [vmem:[#allocation25_spill] sm:$0xff] }
 0x15f   : > { %v757_v9 = vpop.permute.xlu1 %756  ;;  %v908_v63 = vadd.f32 %v844_v18, %v693_v29  ;;  %v909_v33 = vadd.f32 %v845_v4, %v694_v17  ;;  %v4560_v29 = vld [vmem:[#allocation29_spill] sm:$0xff] }
 0x160   : > { %v840_v46 = vmul.f32 %v3419_v48, %v757_v9  ;;  %v841_v47 = vmul.f32 %v3422_v49, %v757_v9  ;;  %v842_v13 = vmul.f32 %v3430_v52, %v757_v9  ;;  %v843_v22 = vmul.f32 %v3433_v53, %v757_v9  ;;  %v4561_v17 = vld [vmem:[#allocation41_spill] sm:$0xff] }
 0x161   : > { %v910_v20 = vadd.f32 %v846_v7, %v695_v26  ;;  %v911_v32 = vadd.f32 %v847_v25, %v696_v50  ;;  %v4562_v26 = vld [vmem:[#allocation31_spill] sm:$0xff]  ;;  %v4563_v50 = vld [vmem:[#allocation33_spill] sm:$0xff] }
 0x162   : > { %v904_v52 = vadd.f32 %v840_v46, %v689_v10  ;;  %v905_v30 = vadd.f32 %v841_v47, %v690_v39  ;;  %v906_v53 = vadd.f32 %v842_v13, %v691_v51  ;;  %v907_v24 = vadd.f32 %v843_v22, %v692_v2  ;;  %v4556_v46 = vld [vmem:[#allocation20_spill] sm:$0xff]  ;;  %v4558_v13 = vld [vmem:[#allocation27_spill] sm:$0xff]  ;;  %v4564_v10 = vld [vmem:[#allocation26_spill] sm:$0xff] }
 0x163   : > { %v4557_v47 = vld [vmem:[#allocation24_spill] sm:$0xff]  ;;  %v4559_v22 = vld [vmem:[#allocation39_spill] sm:$0xff]  ;;  %v4565_v39 = vld [vmem:[#allocation38_spill] sm:$0xff] }
 0x164   : > { %v4566_v51 = vld [vmem:[#allocation28_spill] sm:$0xff]  ;;  %v4567_v2 = vld [vmem:[#allocation30_spill] sm:$0xff] }
 0x165   : > { %v972_v12 = vpop.permute.xlu1 %971 }
 0x166   : > { %v1055_v5 = vmul.f32 %v4526_v41, %v972_v12  ;;  %v1056_v6 = vmul.f32 %v4521_v56, %v972_v12  ;;  %v1057_v48 = vmul.f32 %v4527_v42, %v972_v12  ;;  %v1058_v49 = vmul.f32 %v4522_v19, %v972_v12  ;;  %v4568_v12 = vld [vmem:[#allocation40_spill] sm:$0xff] }
 0x168   : > { %v1120_v28 = vadd.f32 %v1056_v6, %v905_v30  ;;  %v1122_v34 = vadd.f32 %v1058_v49, %v907_v24  ;;  %v1119_v21 = vadd.f32 %v1055_v5, %v904_v52  ;;  %v1121_v36 = vadd.f32 %v1057_v48, %v906_v53  ;;  %v4176_v5 = vld [vmem:[%s4389_s3 + $0x1] ss:$2 sm:$0xf]  ;;  %v4569_v6 = vld [vmem:[#allocation9_spill] sm:$0xff] }
 0x169   : > { %v976_v1 = vpop.permute.xlu1 %975  ;;  %v4181_v48 = vrot.slane %v4176_v5, %v4569_v6 }
 0x16a   : > { %v1059_v3 = vmul.f32 %v4526_v41, %v976_v1  ;;  %v1060_v16 = vmul.f32 %v4521_v56, %v976_v1  ;;  %v1061_v38 = vmul.f32 %v4527_v42, %v976_v1  ;;  %v1062_v11 = vmul.f32 %v4522_v19, %v976_v1  ;;  %v4550_v19 = vld [vmem:[#allocation19_spill] sm:$0xff]  ;;  %v4551_v42 = vld [vmem:[#allocation21_spill] sm:$0xff] }
 0x16b   : > { %v1184_v4 = vmax.f32 %v1120_v28, 0.0  ;;  %v1186_v7 = vmax.f32 %v1122_v34, 0.0  ;;  %v1183_v25 = vmax.f32 %v1119_v21, 0.0  ;;  %v1185_v0 = vmax.f32 %v1121_v36, 0.0 }
 0x16c   : > { %v1123_v8 = vadd.f32 %v1059_v3, %v908_v63  ;;  %v1124_v9 = vadd.f32 %v1060_v16, %v909_v33  ;;  %v1125_v45 = vadd.f32 %v1061_v38, %v910_v20  ;;  %v1126_v18 = vadd.f32 %v1062_v11, %v911_v32 }
 0x16e   : > { %v1188_v58 = vmax.f32 %v1124_v9, 0.0  ;;  %v1190_v59 = vmax.f32 %v1126_v18, 0.0  ;;  %v1187_v61 = vmax.f32 %v1123_v8, 0.0  ;;  %v1189_v60 = vmax.f32 %v1125_v45, 0.0 }
 0x170   : > { %v1220_v55 = vpack.c.bf16 %v1188_v58, %v1184_v4  ;;  %v1222_v41 = vpack.c.bf16 %v1190_v59, %v1186_v7  ;;  %v4145_v27 = vpack.c.bf16 %v1187_v61, %v1183_v25  ;;  %v4147_v56 = vpack.c.bf16 %v1189_v60, %v1185_v0 }
 0x172   : > { %2116 = vmatprep.mubr.bf16.mxu0 %v1220_v55  ;;  %2229 = vmatprep.mubr.bf16.mxu1 %v1222_v41 }
 0x173   : > { %2117 = vmatmul.mubr.bf16.gmra.mxu0 %v4145_v27  ;;  %2230 = vmatmul.mubr.bf16.gmra.mxu1 %v4147_v56 }
 0x174   : > { %2272 = vmatprep.mubr.bf16.mxu0 %v4550_v19  ;;  %2385 = vmatprep.mubr.bf16.mxu1 %v4551_v42 }
 0x17b   : > { %2273 = vmatmul.mubr.bf16.vlgmr.msra.gmra.mxu0 %v4552_v31  ;;  %2386 = vmatmul.mubr.bf16.vlgmr.msra.gmra.mxu1 %v4553_v57 }
 0x17c   : > { %2282 = vmatprep.mubr.bf16.mxu0 %v4554_v43  ;;  %2395 = vmatprep.mubr.bf16.mxu1 %v4555_v44 }
 0x183   : > { %2283 = vmatmul.mubr.bf16.gmra.mxu0 %v4556_v46  ;;  %2396 = vmatmul.mubr.bf16.gmra.mxu1 %v4557_v47 }
 0x184   : > { %2292 = vmatprep.mubr.bf16.mxu0 %v4558_v13  ;;  %2405 = vmatprep.mubr.bf16.mxu1 %v4559_v22 }
 0x18b   : > { %2293 = vmatmul.mubr.bf16.gmra.mxu0 %v4560_v29  ;;  %2406 = vmatmul.mubr.bf16.gmra.mxu1 %v4561_v17 }
 0x18c   : > { %2302 = vmatprep.mubr.bf16.mxu0 %v4562_v26  ;;  %2415 = vmatprep.mubr.bf16.mxu1 %v4563_v50 }
 0x193   : > { %2303 = vmatmul.mubr.bf16.gmra.mxu0 %v4564_v10  ;;  %2416 = vmatmul.mubr.bf16.gmra.mxu1 %v4565_v39 }
 0x194   : > { %2312 = vmatprep.mubr.bf16.mxu0 %v3975_v62  ;;  %2425 = vmatprep.mubr.bf16.mxu1 %v4566_v51  ;;  %v4570_v62 = vld [vmem:[#allocation32_spill] sm:$0xff] }
 0x19b   : > { %2313 = vmatmul.mubr.bf16.gmra.mxu0 %v4567_v2  ;;  %2426 = vmatmul.mubr.bf16.gmra.mxu1 %v4568_v12 }
 0x19c   : > { %2322 = vmatprep.mubr.bf16.mxu0 %v4041_v14  ;;  %2435 = vmatprep.mubr.bf16.mxu1 %v4043_v37  ;;  %v4571_v14 = vld [vmem:[#allocation10_spill] sm:$0xff] }
 0x19d   : > { %v4191_v37 = vrot.slane %v4176_v5, %v4571_v14 }
 0x1a3   : > { %2323 = vmatmul.mubr.bf16.gmra.mxu0 %v4045_v15  ;;  %2436 = vmatmul.mubr.bf16.gmra.mxu1 %v4570_v62 }
 0x1a4   : > { %2332 = vmatprep.mubr.bf16.mxu0 %v4093_v35  ;;  %2445 = vmatprep.mubr.bf16.mxu1 %v4095_v40 }
 0x1a5   : > { %v2048_v49 = vpop.f32.mrf.mxu0 }
 0x1a6   : > { %v2049_v52 = vadd.f32 %v2048_v49, %v4181_v48 }
 0x1a7   : > { %v2050_v53 = vpop.f32.mrf.mxu0 }
 0x1a8   : > { %v2161_v30 = vpop.f32.mrf.mxu1  ;;  %v2051_v15 = vadd.f32 %v2050_v53, %v4191_v37 }
 0x1a9   : > { %v2162_v24 = vadd.f32 %v2161_v30, %v2049_v52  ;;  %v2052_v33 = vpop.f32.mrf.mxu0 }
 0x1aa   : > { %v2163_v63 = vpop.f32.mrf.mxu1  ;;  %v2053_v40 = vadd.f32 %v2052_v33, %v4181_v48 }
 0x1ab   : > { %2466 = vst [vmem:[%s4195_s11] sm:$0xff] %v2162_v24  ;;  %v2164_v35 = vadd.f32 %v2163_v63, %v2051_v15  ;;  %2333 = vmatmul.mubr.bf16.gmra.mxu0 %v4097_v54  ;;  %2446 = vmatmul.mubr.bf16.gmra.mxu1 %v4099_v23  ;;  %v2054_v32 = vpop.f32.mrf.mxu0 }
 0x1ac   : > { %v2165_v20 = vpop.f32.mrf.mxu1  ;;  %2342 = vmatprep.mubr.bf16.mxu0 %v1220_v55  ;;  %2455 = vmatprep.mubr.bf16.mxu1 %v1222_v41  ;;  %v2055_v28 = vadd.f32 %v2054_v32, %v4191_v37 }
 0x1ad   : > { %2467 = vst [vmem:[%s4195_s11 + $0x8] sm:$0xff] %v2164_v35  ;;  %v2166_v1 = vadd.f32 %v2165_v20, %v2053_v40 }
 0x1ae   : > { %v2167_v34 = vpop.f32.mrf.mxu1 }
 0x1af   : > { %2470 = vst [vmem:[%s4195_s11 + $0x20] sm:$0xff] %v2166_v1  ;;  %v2168_v21 = vadd.f32 %v2167_v34, %v2055_v28 }
 0x1b1   : > { %2471 = vst [vmem:[%s4195_s11 + $0x28] sm:$0xff] %v2168_v21 }
 0x1b2   : > { %v2058_v36 = vpop.f32.mrf.mxu0  ;;  %v2171_v3 = vpop.f32.mrf.mxu1 }
 0x1b3   : > { %v2059_v54 = vadd.f32 %v2058_v36, %v4181_v48  ;;  %2343 = vmatmul.mubr.bf16.gmra.mxu0 %v4145_v27  ;;  %2456 = vmatmul.mubr.bf16.gmra.mxu1 %v4147_v56 }
 0x1b4   : > { %v2060_v23 = vpop.f32.mrf.mxu0  ;;  %v2173_v16 = vpop.f32.mrf.mxu1 }
 0x1b5   : > { %v2172_v38 = vadd.f32 %v2171_v3, %v2059_v54  ;;  %v2061_v11 = vadd.f32 %v2060_v23, %v4191_v37 }
 0x1b6   : > { %v2062_v8 = vpop.f32.mrf.mxu0  ;;  %v2175_v9 = vpop.f32.mrf.mxu1 }
 0x1b7   : > { %2474 = vst [vmem:[%s4195_s11 + $0x40] sm:$0xff] %v2172_v38  ;;  %v2174_v45 = vadd.f32 %v2173_v16, %v2061_v11  ;;  %v2063_v18 = vadd.f32 %v2062_v8, %v4181_v48 }
 0x1b8   : > { %v2064_v4 = vpop.f32.mrf.mxu0  ;;  %v2177_v0 = vpop.f32.mrf.mxu1 }
 0x1b9   : > { %2475 = vst [vmem:[%s4195_s11 + $0x48] sm:$0xff] %v2174_v45  ;;  %v2176_v7 = vadd.f32 %v2175_v9, %v2063_v18  ;;  %v2065_v25 = vadd.f32 %v2064_v4, %v4191_v37 }
 0x1bb   : > { %2478 = vst [vmem:[%s4195_s11 + $0x60] sm:$0xff] %v2176_v7  ;;  %v2178_v58 = vadd.f32 %v2177_v0, %v2065_v25  ;;  %v2068_v59 = vpop.f32.mrf.mxu0 }
 0x1bc   : > { %v2069_v61 = vadd.f32 %v2068_v59, %v4181_v48 }
 0x1bd   : > { %2479 = vst [vmem:[%s4195_s11 + $0x68] sm:$0xff] %v2178_v58  ;;  %v2181_v60 = vpop.f32.mrf.mxu1  ;;  %v2070_v55 = vpop.f32.mrf.mxu0 }
 0x1be   : > { %v2182_v41 = vadd.f32 %v2181_v60, %v2069_v61  ;;  %v2071_v27 = vadd.f32 %v2070_v55, %v4191_v37 }
 0x1bf   : > { %v2183_v56 = vpop.f32.mrf.mxu1  ;;  %v2072_v19 = vpop.f32.mrf.mxu0 }
 0x1c0   : > { %2482 = vst [vmem:[%s4195_s11 + $0x80] sm:$0xff] %v2182_v41  ;;  %v2184_v42 = vadd.f32 %v2183_v56, %v2071_v27  ;;  %v2073_v31 = vadd.f32 %v2072_v19, %v4181_v48 }
 0x1c1   : > { %v2185_v57 = vpop.f32.mrf.mxu1  ;;  %v2074_v43 = vpop.f32.mrf.mxu0 }
 0x1c2   : > { %2483 = vst [vmem:[%s4195_s11 + $0x88] sm:$0xff] %v2184_v42  ;;  %v2186_v44 = vadd.f32 %v2185_v57, %v2073_v31  ;;  %v2075_v46 = vadd.f32 %v2074_v43, %v4191_v37 }
 0x1c3   : > { %v2187_v47 = vpop.f32.mrf.mxu1 }
 0x1c4   : > { %2486 = vst [vmem:[%s4195_s11 + $0xa0] sm:$0xff] %v2186_v44  ;;  %v2188_v13 = vadd.f32 %v2187_v47, %v2075_v46 }
 0x1c6   : > { %2487 = vst [vmem:[%s4195_s11 + $0xa8] sm:$0xff] %v2188_v13 }
 0x1cb   : > { %v2078_v22 = vpop.f32.mrf.mxu0 }
 0x1cc   : > { %v2079_v29 = vadd.f32 %v2078_v22, %v4181_v48  ;;  %v2191_v26 = vpop.f32.mrf.mxu1 }
 0x1cd   : > { %v2080_v17 = vpop.f32.mrf.mxu0 }
 0x1ce   : > { %v2081_v50 = vadd.f32 %v2080_v17, %v4191_v37  ;;  %v2192_v10 = vadd.f32 %v2191_v26, %v2079_v29  ;;  %v2193_v51 = vpop.f32.mrf.mxu1 }
 0x1cf   : > { %v2082_v39 = vpop.f32.mrf.mxu0 }
 0x1d0   : > { %v2083_v2 = vadd.f32 %v2082_v39, %v4181_v48  ;;  %2490 = vst [vmem:[%s4195_s11 + $0xc0] sm:$0xff] %v2192_v10  ;;  %v2194_v12 = vadd.f32 %v2193_v51, %v2081_v50  ;;  %v2195_v62 = vpop.f32.mrf.mxu1 }
 0x1d1   : > { %v2084_v6 = vpop.f32.mrf.mxu0 }
 0x1d2   : > { %v2085_v14 = vadd.f32 %v2084_v6, %v4191_v37  ;;  %2491 = vst [vmem:[%s4195_s11 + $0xc8] sm:$0xff] %v2194_v12  ;;  %v2196_v49 = vadd.f32 %v2195_v62, %v2083_v2  ;;  %v2197_v52 = vpop.f32.mrf.mxu1 }
 0x1d4   : > { %2494 = vst [vmem:[%s4195_s11 + $0xe0] sm:$0xff] %v2196_v49  ;;  %v2198_v30 = vadd.f32 %v2197_v52, %v2085_v14  ;;  %v4572_v52 = vld [vmem:[#allocation11_spill] sm:$0xff] }
 0x1d6   : > { %2495 = vst [vmem:[%s4195_s11 + $0xe8] sm:$0xff] %v2198_v30  ;;  %v4261_v30 = vrot.slane %v4176_v5, %v4572_v52 }
 0x1e6   : > { %v2088_v53 = vpop.f32.mrf.mxu0  ;;  %v2201_v24 = vpop.f32.mrf.mxu1 }
 0x1e7   : > { %v2089_v15 = vadd.f32 %v2088_v53, %v4181_v48 }
 0x1e8   : > { %v2090_v63 = vpop.f32.mrf.mxu0  ;;  %v2203_v33 = vpop.f32.mrf.mxu1 }
 0x1e9   : > { %v2202_v35 = vadd.f32 %v2201_v24, %v2089_v15  ;;  %v2091_v40 = vadd.f32 %v2090_v63, %v4191_v37 }
 0x1ea   : > { %v2092_v20 = vpop.f32.mrf.mxu0  ;;  %v2205_v32 = vpop.f32.mrf.mxu1 }
 0x1eb   : > { %2498 = vst [vmem:[%s4195_s11 + $0x100] sm:$0xff] %v2202_v35  ;;  %v2204_v1 = vadd.f32 %v2203_v33, %v2091_v40  ;;  %v2093_v28 = vadd.f32 %v2092_v20, %v4181_v48  ;;  %v4573_v33 = vld [vmem:[#allocation12_spill] sm:$0xff] }
 0x1ec   : > { %v2094_v34 = vpop.f32.mrf.mxu0  ;;  %v2207_v3 = vpop.f32.mrf.mxu1  ;;  %v4267_v35 = vrot.slane %v4176_v5, %v4573_v33 }
 0x1ed   : > { %2499 = vst [vmem:[%s4195_s11 + $0x108] sm:$0xff] %v2204_v1  ;;  %v2206_v21 = vadd.f32 %v2205_v32, %v2093_v28  ;;  %v2095_v36 = vadd.f32 %v2094_v34, %v4191_v37 }
 0x1ef   : > { %2502 = vst [vmem:[%s4195_s11 + $0x120] sm:$0xff] %v2206_v21  ;;  %v2208_v54 = vadd.f32 %v2207_v3, %v2095_v36 }
 0x1f1   : > { %2503 = vst [vmem:[%s4195_s11 + $0x128] sm:$0xff] %v2208_v54 }
 0x1fe   : > { %v2098_v23 = vpop.f32.mrf.mxu0  ;;  %v2211_v16 = vpop.f32.mrf.mxu1 }
 0x1ff   : > { %v2099_v38 = vadd.f32 %v2098_v23, %v4181_v48 }
 0x200   : > { %v2100_v11 = vpop.f32.mrf.mxu0  ;;  %v2213_v8 = vpop.f32.mrf.mxu1 }
 0x201   : > { %v2212_v9 = vadd.f32 %v2211_v16, %v2099_v38  ;;  %v2101_v45 = vadd.f32 %v2100_v11, %v4191_v37 }
 0x202   : > { %v2102_v18 = vpop.f32.mrf.mxu0  ;;  %v2215_v4 = vpop.f32.mrf.mxu1 }
 0x203   : > { %2506 = vst [vmem:[%s4195_s11 + $0x140] sm:$0xff] %v2212_v9  ;;  %v2214_v7 = vadd.f32 %v2213_v8, %v2101_v45  ;;  %v2103_v25 = vadd.f32 %v2102_v18, %v4181_v48 }
 0x204   : > { %v2104_v0 = vpop.f32.mrf.mxu0  ;;  %v2217_v61 = vpop.f32.mrf.mxu1 }
 0x205   : > { %2507 = vst [vmem:[%s4195_s11 + $0x148] sm:$0xff] %v2214_v7  ;;  %v2216_v58 = vadd.f32 %v2215_v4, %v2103_v25  ;;  %v2105_v59 = vadd.f32 %v2104_v0, %v4191_v37 }
 0x207   : > { %2510 = vst [vmem:[%s4195_s11 + $0x160] sm:$0xff] %v2216_v58  ;;  %v2218_v60 = vadd.f32 %v2217_v61, %v2105_v59 }
 0x209   : > { %2511 = vst [vmem:[%s4195_s11 + $0x168] sm:$0xff] %v2218_v60 }
 0x216   : > { %v2108_v55 = vpop.f32.mrf.mxu0  ;;  %v2221_v27 = vpop.f32.mrf.mxu1 }
 0x217   : > { %v2109_v41 = vadd.f32 %v2108_v55, %v4181_v48 }
 0x218   : > { %v2110_v56 = vpop.f32.mrf.mxu0  ;;  %v2223_v31 = vpop.f32.mrf.mxu1 }
 0x219   : > { %v2222_v19 = vadd.f32 %v2221_v27, %v2109_v41  ;;  %v2111_v42 = vadd.f32 %v2110_v56, %v4191_v37 }
 0x21a   : > { %v2112_v57 = vpop.f32.mrf.mxu0  ;;  %v2225_v46 = vpop.f32.mrf.mxu1 }
 0x21b   : > { %2514 = vst [vmem:[%s4195_s11 + $0x180] sm:$0xff] %v2222_v19  ;;  %v2224_v43 = vadd.f32 %v2223_v31, %v2111_v42  ;;  %v2113_v44 = vadd.f32 %v2112_v57, %v4181_v48 }
 0x21c   : > { %v2114_v47 = vpop.f32.mrf.mxu0  ;;  %v2227_v29 = vpop.f32.mrf.mxu1 }
 0x21d   : > { %2515 = vst [vmem:[%s4195_s11 + $0x188] sm:$0xff] %v2224_v43  ;;  %v2226_v13 = vadd.f32 %v2225_v46, %v2113_v44  ;;  %v2115_v22 = vadd.f32 %v2114_v47, %v4191_v37 }
 0x21f   : > { %2518 = vst [vmem:[%s4195_s11 + $0x1a0] sm:$0xff] %v2226_v13  ;;  %v2228_v17 = vadd.f32 %v2227_v29, %v2115_v22 }
 0x221   : > { %2519 = vst [vmem:[%s4195_s11 + $0x1a8] sm:$0xff] %v2228_v17 }
 0x233   : > { %v2118_v26 = vpop.f32.mrf.mxu0  ;;  %v2231_v50 = vpop.f32.mrf.mxu1 }
 0x234   : > { %v2119_v10 = vadd.f32 %v2118_v26, %v4181_v48 }
 0x235   : > { %v2120_v39 = vpop.f32.mrf.mxu0  ;;  %v2233_v51 = vpop.f32.mrf.mxu1 }
 0x236   : > { %v2232_v2 = vadd.f32 %v2231_v50, %v2119_v10  ;;  %v2121_v12 = vadd.f32 %v2120_v39, %v4191_v37 }
 0x237   : > { %v2122_v6 = vpop.f32.mrf.mxu0  ;;  %v2235_v62 = vpop.f32.mrf.mxu1 }
 0x238   : > { %2522 = vst [vmem:[%s4195_s11 + $0x1c0] sm:$0xff] %v2232_v2  ;;  %v2234_v14 = vadd.f32 %v2233_v51, %v2121_v12  ;;  %v2123_v49 = vadd.f32 %v2122_v6, %v4181_v48 }
 0x239   : > { %v2124_v53 = vpop.f32.mrf.mxu0  ;;  %v2237_v24 = vpop.f32.mrf.mxu1 }
 0x23a   : > { %2523 = vst [vmem:[%s4195_s11 + $0x1c8] sm:$0xff] %v2234_v14  ;;  %v2236_v15 = vadd.f32 %v2235_v62, %v2123_v49  ;;  %v2125_v63 = vadd.f32 %v2124_v53, %v4191_v37 }
 0x23b   : > { %v2274_v40 = vpop.f32.mrf.mxu0  ;;  %v2387_v20 = vpop.f32.mrf.mxu1 }
 0x23c   : > { %2526 = vst [vmem:[%s4195_s11 + $0x1e0] sm:$0xff] %v2236_v15  ;;  %v2238_v48 = vadd.f32 %v2237_v24, %v2125_v63  ;;  %v2275_v32 = vadd.f32 %v2274_v40, %v4261_v30 }
 0x23d   : > { %v2276_v1 = vpop.f32.mrf.mxu0  ;;  %v2389_v28 = vpop.f32.mrf.mxu1 }
 0x23e   : > { %2527 = vst [vmem:[%s4195_s11 + $0x1e8] sm:$0xff] %v2238_v48  ;;  %v2388_v34 = vadd.f32 %v2387_v20, %v2275_v32  ;;  %v2277_v21 = vadd.f32 %v2276_v1, %v4267_v35 }
 0x23f   : > { %v2278_v36 = vpop.f32.mrf.mxu0  ;;  %v2391_v37 = vpop.f32.mrf.mxu1 }
 0x240   : > { %2468 = vst [vmem:[%s4195_s11 + $0x10] sm:$0xff] %v2388_v34  ;;  %v2390_v5 = vadd.f32 %v2389_v28, %v2277_v21  ;;  %v2279_v3 = vadd.f32 %v2278_v36, %v4261_v30 }
 0x241   : > { %v2280_v54 = vpop.f32.mrf.mxu0  ;;  %v2393_v23 = vpop.f32.mrf.mxu1 }
 0x242   : > { %2469 = vst [vmem:[%s4195_s11 + $0x18] sm:$0xff] %v2390_v5  ;;  %v2392_v16 = vadd.f32 %v2391_v37, %v2279_v3  ;;  %v2281_v38 = vadd.f32 %v2280_v54, %v4267_v35 }
 0x243   : > { %v2284_v11 = vpop.f32.mrf.mxu0  ;;  %v2397_v8 = vpop.f32.mrf.mxu1 }
 0x244   : > { %2472 = vst [vmem:[%s4195_s11 + $0x30] sm:$0xff] %v2392_v16  ;;  %v2394_v9 = vadd.f32 %v2393_v23, %v2281_v38  ;;  %v2285_v45 = vadd.f32 %v2284_v11, %v4261_v30 }
 0x245   : > { %v2286_v18 = vpop.f32.mrf.mxu0  ;;  %v2399_v4 = vpop.f32.mrf.mxu1 }
 0x246   : > { %2473 = vst [vmem:[%s4195_s11 + $0x38] sm:$0xff] %v2394_v9  ;;  %v2398_v7 = vadd.f32 %v2397_v8, %v2285_v45  ;;  %v2287_v25 = vadd.f32 %v2286_v18, %v4267_v35 }
 0x247   : > { %v2288_v0 = vpop.f32.mrf.mxu0  ;;  %v2401_v58 = vpop.f32.mrf.mxu1 }
 0x248   : > { %2476 = vst [vmem:[%s4195_s11 + $0x50] sm:$0xff] %v2398_v7  ;;  %v2400_v59 = vadd.f32 %v2399_v4, %v2287_v25  ;;  %v2289_v61 = vadd.f32 %v2288_v0, %v4261_v30 }
 0x249   : > { %v2290_v60 = vpop.f32.mrf.mxu0  ;;  %v2403_v55 = vpop.f32.mrf.mxu1 }
 0x24a   : > { %2477 = vst [vmem:[%s4195_s11 + $0x58] sm:$0xff] %v2400_v59  ;;  %v2402_v41 = vadd.f32 %v2401_v58, %v2289_v61  ;;  %v2291_v27 = vadd.f32 %v2290_v60, %v4267_v35 }
 0x24b   : > { %v2294_v56 = vpop.f32.mrf.mxu0  ;;  %v2407_v19 = vpop.f32.mrf.mxu1 }
 0x24c   : > { %2480 = vst [vmem:[%s4195_s11 + $0x70] sm:$0xff] %v2402_v41  ;;  %v2404_v42 = vadd.f32 %v2403_v55, %v2291_v27  ;;  %v2295_v31 = vadd.f32 %v2294_v56, %v4261_v30 }
 0x24d   : > { %v2296_v57 = vpop.f32.mrf.mxu0  ;;  %v2409_v43 = vpop.f32.mrf.mxu1 }
 0x24e   : > { %2481 = vst [vmem:[%s4195_s11 + $0x78] sm:$0xff] %v2404_v42  ;;  %v2408_v44 = vadd.f32 %v2407_v19, %v2295_v31  ;;  %v2297_v46 = vadd.f32 %v2296_v57, %v4267_v35 }
 0x24f   : > { %v2298_v47 = vpop.f32.mrf.mxu0  ;;  %v2411_v13 = vpop.f32.mrf.mxu1 }
 0x250   : > { %2484 = vst [vmem:[%s4195_s11 + $0x90] sm:$0xff] %v2408_v44  ;;  %v2410_v22 = vadd.f32 %v2409_v43, %v2297_v46  ;;  %v2299_v29 = vadd.f32 %v2298_v47, %v4261_v30 }
 0x251   : > { %v2300_v17 = vpop.f32.mrf.mxu0  ;;  %v2413_v26 = vpop.f32.mrf.mxu1 }
 0x252   : > { %2485 = vst [vmem:[%s4195_s11 + $0x98] sm:$0xff] %v2410_v22  ;;  %v2412_v50 = vadd.f32 %v2411_v13, %v2299_v29  ;;  %v2301_v10 = vadd.f32 %v2300_v17, %v4267_v35 }
 0x253   : > { %v2304_v39 = vpop.f32.mrf.mxu0  ;;  %v2417_v51 = vpop.f32.mrf.mxu1 }
 0x254   : > { %2488 = vst [vmem:[%s4195_s11 + $0xb0] sm:$0xff] %v2412_v50  ;;  %v2414_v2 = vadd.f32 %v2413_v26, %v2301_v10  ;;  %v2305_v12 = vadd.f32 %v2304_v39, %v4261_v30 }
 0x255   : > { %v2306_v6 = vpop.f32.mrf.mxu0  ;;  %v2419_v62 = vpop.f32.mrf.mxu1 }
 0x256   : > { %2489 = vst [vmem:[%s4195_s11 + $0xb8] sm:$0xff] %v2414_v2  ;;  %v2418_v14 = vadd.f32 %v2417_v51, %v2305_v12  ;;  %v2307_v49 = vadd.f32 %v2306_v6, %v4267_v35 }
 0x257   : > { %v2308_v52 = vpop.f32.mrf.mxu0  ;;  %v2421_v53 = vpop.f32.mrf.mxu1 }
 0x258   : > { %2492 = vst [vmem:[%s4195_s11 + $0xd0] sm:$0xff] %v2418_v14  ;;  %v2420_v24 = vadd.f32 %v2419_v62, %v2307_v49  ;;  %v2309_v15 = vadd.f32 %v2308_v52, %v4261_v30 }
 0x259   : > { %v2310_v63 = vpop.f32.mrf.mxu0  ;;  %v2423_v33 = vpop.f32.mrf.mxu1 }
 0x25a   : > { %2493 = vst [vmem:[%s4195_s11 + $0xd8] sm:$0xff] %v2420_v24  ;;  %v2422_v40 = vadd.f32 %v2421_v53, %v2309_v15  ;;  %v2311_v20 = vadd.f32 %v2310_v63, %v4267_v35 }
 0x25b   : > { %v2314_v48 = vpop.f32.mrf.mxu0  ;;  %v2427_v32 = vpop.f32.mrf.mxu1 }
 0x25c   : > { %2496 = vst [vmem:[%s4195_s11 + $0xf0] sm:$0xff] %v2422_v40  ;;  %v2424_v1 = vadd.f32 %v2423_v33, %v2311_v20  ;;  %v2315_v28 = vadd.f32 %v2314_v48, %v4261_v30 }
 0x25d   : > { %v2316_v34 = vpop.f32.mrf.mxu0  ;;  %v2429_v21 = vpop.f32.mrf.mxu1 }
 0x25e   : > { %2497 = vst [vmem:[%s4195_s11 + $0xf8] sm:$0xff] %v2424_v1  ;;  %v2428_v36 = vadd.f32 %v2427_v32, %v2315_v28  ;;  %v2317_v37 = vadd.f32 %v2316_v34, %v4267_v35 }
 0x25f   : > { %v2318_v5 = vpop.f32.mrf.mxu0  ;;  %v2431_v3 = vpop.f32.mrf.mxu1 }
 0x260   : > { %2500 = vst [vmem:[%s4195_s11 + $0x110] sm:$0xff] %v2428_v36  ;;  %v2430_v54 = vadd.f32 %v2429_v21, %v2317_v37  ;;  %v2319_v23 = vadd.f32 %v2318_v5, %v4261_v30 }
 0x261   : > { %v2320_v16 = vpop.f32.mrf.mxu0  ;;  %v2433_v38 = vpop.f32.mrf.mxu1 }
 0x262   : > { %2501 = vst [vmem:[%s4195_s11 + $0x118] sm:$0xff] %v2430_v54  ;;  %v2432_v11 = vadd.f32 %v2431_v3, %v2319_v23  ;;  %v2321_v8 = vadd.f32 %v2320_v16, %v4267_v35 }
 0x263   : > { %v2324_v9 = vpop.f32.mrf.mxu0  ;;  %v2437_v45 = vpop.f32.mrf.mxu1 }
 0x264   : > { %2504 = vst [vmem:[%s4195_s11 + $0x130] sm:$0xff] %v2432_v11  ;;  %v2434_v18 = vadd.f32 %v2433_v38, %v2321_v8  ;;  %v2325_v4 = vadd.f32 %v2324_v9, %v4261_v30 }
 0x265   : > { %v2326_v7 = vpop.f32.mrf.mxu0  ;;  %v2439_v25 = vpop.f32.mrf.mxu1 }
 0x266   : > { %2505 = vst [vmem:[%s4195_s11 + $0x138] sm:$0xff] %v2434_v18  ;;  %v2438_v0 = vadd.f32 %v2437_v45, %v2325_v4  ;;  %v2327_v58 = vadd.f32 %v2326_v7, %v4267_v35 }
 0x267   : > { %v2328_v59 = vpop.f32.mrf.mxu0  ;;  %v2441_v61 = vpop.f32.mrf.mxu1 }
 0x268   : > { %2508 = vst [vmem:[%s4195_s11 + $0x150] sm:$0xff] %v2438_v0  ;;  %v2440_v60 = vadd.f32 %v2439_v25, %v2327_v58  ;;  %v2329_v55 = vadd.f32 %v2328_v59, %v4261_v30 }
 0x269   : > { %v2330_v41 = vpop.f32.mrf.mxu0  ;;  %v2443_v27 = vpop.f32.mrf.mxu1 }
 0x26a   : > { %2509 = vst [vmem:[%s4195_s11 + $0x158] sm:$0xff] %v2440_v60  ;;  %v2442_v56 = vadd.f32 %v2441_v61, %v2329_v55  ;;  %v2331_v19 = vadd.f32 %v2330_v41, %v4267_v35 }
 0x26b   : > { %v2334_v42 = vpop.f32.mrf.mxu0  ;;  %v2447_v31 = vpop.f32.mrf.mxu1 }
 0x26c   : > { %2512 = vst [vmem:[%s4195_s11 + $0x170] sm:$0xff] %v2442_v56  ;;  %v2444_v57 = vadd.f32 %v2443_v27, %v2331_v19  ;;  %v2335_v43 = vadd.f32 %v2334_v42, %v4261_v30 }
 0x26d   : > { %v2336_v44 = vpop.f32.mrf.mxu0  ;;  %v2449_v46 = vpop.f32.mrf.mxu1 }
 0x26e   : > { %2513 = vst [vmem:[%s4195_s11 + $0x178] sm:$0xff] %v2444_v57  ;;  %v2448_v47 = vadd.f32 %v2447_v31, %v2335_v43  ;;  %v2337_v13 = vadd.f32 %v2336_v44, %v4267_v35 }
 0x26f   : > { %v2338_v22 = vpop.f32.mrf.mxu0  ;;  %v2451_v29 = vpop.f32.mrf.mxu1 }
 0x270   : > { %2516 = vst [vmem:[%s4195_s11 + $0x190] sm:$0xff] %v2448_v47  ;;  %v2450_v17 = vadd.f32 %v2449_v46, %v2337_v13  ;;  %v2339_v26 = vadd.f32 %v2338_v22, %v4261_v30 }
 0x271   : > { %v2340_v50 = vpop.f32.mrf.mxu0  ;;  %v2453_v10 = vpop.f32.mrf.mxu1 }
 0x272   : > { %2517 = vst [vmem:[%s4195_s11 + $0x198] sm:$0xff] %v2450_v17  ;;  %v2452_v39 = vadd.f32 %v2451_v29, %v2339_v26  ;;  %v2341_v51 = vadd.f32 %v2340_v50, %v4267_v35 }
 0x273   : > { %v2344_v2 = vpop.f32.mrf.mxu0  ;;  %v2457_v12 = vpop.f32.mrf.mxu1 }
 0x274   : > { %2520 = vst [vmem:[%s4195_s11 + $0x1b0] sm:$0xff] %v2452_v39  ;;  %v2454_v6 = vadd.f32 %v2453_v10, %v2341_v51  ;;  %v2345_v62 = vadd.f32 %v2344_v2, %v4261_v30 }
 0x275   : > { %v2346_v14 = vpop.f32.mrf.mxu0  ;;  %v2459_v49 = vpop.f32.mrf.mxu1 }
 0x276   : > { %2521 = vst [vmem:[%s4195_s11 + $0x1b8] sm:$0xff] %v2454_v6  ;;  %v2458_v52 = vadd.f32 %v2457_v12, %v2345_v62  ;;  %v2347_v53 = vadd.f32 %v2346_v14, %v4267_v35 }
 0x277   : > { %v2348_v24 = vpop.f32.mrf.mxu0  ;;  %v2461_v15 = vpop.f32.mrf.mxu1 }
 0x278   : > { %2524 = vst [vmem:[%s4195_s11 + $0x1d0] sm:$0xff] %v2458_v52  ;;  %v2460_v63 = vadd.f32 %v2459_v49, %v2347_v53  ;;  %v2349_v33 = vadd.f32 %v2348_v24, %v4261_v30 }
 0x279   : > { %v2350_v40 = vpop.f32.mrf.mxu0  ;;  %v2463_v32 = vpop.f32.mrf.mxu1 }
 0x27a   : > { %2525 = vst [vmem:[%s4195_s11 + $0x1d8] sm:$0xff] %v2460_v63  ;;  %v2462_v20 = vadd.f32 %v2461_v15, %v2349_v33  ;;  %v2351_v48 = vadd.f32 %v2350_v40, %v4267_v35 }
 0x27c   : > { %2528 = vst [vmem:[%s4195_s11 + $0x1f0] sm:$0xff] %v2462_v20  ;;  %v2464_v30 = vadd.f32 %v2463_v32, %v2351_v48 }
 0x27e   : > { %2529 = vst [vmem:[%s4195_s11 + $0x1f8] sm:$0xff] %v2464_v30 }
 0x27f   : > { %3097 = shalt.err (!%p3094_p0)
}
 0x280   : > { %s3098_s30 = scalar_lea.hbm %s4338_s22, 8192  ;;  %s3102_s7 = scalar_lea.hbm %s4390_s4, 16384 }
 0x281   : > { %p3099_p1 = scmp.ne.s32.totalorder %s4338_s22, %s3098_s30  ;;  %p3103_p4 = scmp.lt.s32.totalorder %s4338_s22, %s4390_s4 }
 0x282   : > { %p3104_p7 = scmp.lt.s32.totalorder %s3102_s7, %s3098_s30 }
 0x283   : > { %p3100_p2 = pnand %p3099_p1, %p3223_p5 }
 0x284   : > { %p3105_p6 = por %p3104_p7, %p3103_p4 }
 0x285   : > { %p3101_p3 = pneg %p3100_p2 }
 0x287   : > { %p3106_p8 = pnand %p3105_p6, %p3101_p3 }
 0x289   : > { %3109 = shalt.err (!%p3106_p8)
}
 0x28a   : > { %s3158_s10 = smov 512   ;;  %s3159_s11 = smov 32  }
 0x28b   : > { %2772 = dma.vmem_to_hbm [thread:$0]  (%p3223_p5), %s4340_s13, 8192, %s4338_s22, %s4346_s19, %s3158_s10, %s3158_s10, %s3159_s11  }
 0x28c PF: > { %p2784_p9 = scmp.ge.s32.totalorder %s3148_s18, 2  ;;  %s2560_s12 = sand.u32 1, %s3136_s15  }
 0x28d   : > { %p4574_p10 = scmp.ne.s32.totalorder %s4439_s26, 0  ;;  %s2561_s14 = scalar_lea.sflag [#allocation4], %s2560_s12 }
 0x28f   : > { %p2779_p11 = pnand %p2784_p9, %p4574_p10 }
 0x291   : > { %p2780_p12 = pneg %p2779_p11 }
 0x293   : > { %3131 = dma.done.wait (%p2780_p12), %s2561_s14, 8192  }
 0x294   : > { %3133 = vsyncadd (%p2780_p12), %s2561_s14, 4294959104  ;;  %p15_p13 = scmp.ge.s32.totalorder %s3210_s21, 4   ;;  %s4575_s15 = smov %s3140_s16 }
 0x295   : > { %s4576_s16 = smov %s3144_s17  ;;  %s4577_s17 = smov %s3221_s24 }
 0x296   : > { %s4578_s18 = smov %s3210_s21  ;;  %17 = sbr.rel (!%p15_p13) target bundleno = 4 (0x4), region = 80 }
 0x29b   :  { %2566 = vsyncpa [#allocation3], 1 }
 0x29c   :  { %2568 = vsyncpa [#allocation3 + $0x1], 1 }
 0x29d   :  { %2569 = vsyncpa [#allocation4], 1 }
 0x29e   :  { %2571 = vsyncpa [#allocation4 + $0x1], 1 }

</bundles_post_ra>
